<compile_context>
chip_gen: v7x
topology: tpu7x:2x2x1
jax: 0.10.0
libtpu: 0.0.40
codegen_flags: <defaults>
</compile_context>

<pallas_src>
import functools

import jax
import jax.numpy as jnp
from jax.experimental import pallas as pl
from jax.experimental.pallas import tpu as pltpu

INPUT_DIM = 50
HIDDEN_DIM = 64
TILE_B = 4096   # rows per grid step (f32 x tile = 800 KiB; x2 for double buffering)
CHUNK_B = 256   # rows per inner sub-tile; keeps live h1/h2 vregs under the 64-vreg file


def _round_up(n, m):
    return ((n + m - 1) // m) * m


def _mlp_kernel(x_ref, w1_ref, b1_ref, w2_ref, b2_ref, w3_ref, b3_ref, o_ref, *, chunk):
    """Fused 3-layer MLP on one batch tile, sub-tiled in `chunk`-row pieces."""
    # Hoist the small resident operands out of the chunk loop (broadcasts aren't CSE'd).
    w1 = w1_ref[...]            # [IN, H]  (bf16 on the fast path)
    b1 = b1_ref[...]            # [1, H]   f32
    w2 = w2_ref[...]            # [H, H]
    b2 = b2_ref[...]            # [1, H]   f32
    w3 = w3_ref[...]            # [1, H]   f32 (used on the VPU)
    b3 = b3_ref[0, 0]           # scalar   f32 (SMEM)

    tile = x_ref.shape[0]
    num_chunks = tile // chunk  # static Python int

    # Static Python loop == fully unrolled inner loop with static slice offsets, so
    # every VMEM load/store below is an aligned, unmasked vector access.
    for c in range(num_chunks):
        row0 = c * chunk
        xs = x_ref[pl.ds(row0, chunk), :].astype(w1.dtype)          # cast only the MXU operand
        h1 = jnp.dot(xs, w1, preferred_element_type=jnp.float32) + b1
        h1 = jnp.maximum(h1, 0.0)
        h2 = jnp.dot(h1.astype(w2.dtype), w2, preferred_element_type=jnp.float32) + b2
        h2 = jnp.maximum(h2, 0.0)
        # fc3 has out_features == 1: an N=1 MXU matmul wastes the array; use a VPU
        # multiply + XLU lane-reduce and write directly into the lane-dense output.
        y = jnp.sum(h2 * w3, axis=-1) + b3                          # [chunk] f32
        o_ref[:, pl.ds(row0, chunk)] = y.reshape(1, chunk).astype(o_ref.dtype)


def ranking_model_forward(x, params, *, tile_b=TILE_B, chunk_b=CHUNK_B, use_bf16=True):
    """x: [B, INPUT_DIM] -> [B, 1] float32 (matches PyTorch RankingModel forward)."""
    w1, b1, w2, b2, w3, b3 = params
    B, in_dim = x.shape
    hid = w1.shape[1]
    assert tile_b % chunk_b == 0

    # Stream x through HBM in its native dtype; only the MXU operands are narrowed
    # (x/h1 inside the kernel, the tiny resident weights here).
    mxu_dtype = jnp.bfloat16 if use_bf16 else jnp.float32
    w1_c = w1.astype(mxu_dtype)
    w2_c = w2.astype(mxu_dtype)
    b1_r = b1.reshape(1, hid).astype(jnp.float32)
    b2_r = b2.reshape(1, hid).astype(jnp.float32)
    w3_r = w3.reshape(1, hid).astype(jnp.float32)
    b3_s = b3.reshape(1, 1).astype(jnp.float32)

    # No wrapper-side padding: last tile may be partial; its garbage rows are discarded.
    tile = min(tile_b, _round_up(B, chunk_b))
    grid = pl.cdiv(B, tile)

    kernel = functools.partial(_mlp_kernel, chunk=chunk_b)
    const = lambda s: pl.BlockSpec(s, lambda i: (0,) * len(s))      # resident operands

    out = pl.pallas_call(
        kernel,
        out_shape=jax.ShapeDtypeStruct((grid, tile), jnp.float32),  # lane-dense rows
        grid=(grid,),
        in_specs=[
            pl.BlockSpec((tile, in_dim), lambda i: (i, 0)),         # streamed batch tile
            const(w1_c.shape), const(b1_r.shape),
            const(w2_c.shape), const(b2_r.shape),
            const(w3_r.shape),
            pl.BlockSpec(memory_space=pltpu.SMEM),                  # b3 scalar
        ],
        out_specs=pl.BlockSpec((1, tile), lambda i: (i, 0)),
        compiler_params=pltpu.CompilerParams(
            # Batch axis is embarrassingly parallel -> multi-core split where available.
            dimension_semantics=("parallel",),
            vmem_limit_bytes=32 * 1024 * 1024,
        ),
    )(x, w1_c, b1_r, w2_c, b2_r, w3_r, b3_s)

    return out.reshape(grid * tile, 1)[:B]


def init_params(key, input_dim=INPUT_DIM, hidden_dim=HIDDEN_DIM):
    # Deterministic init mimicking nn.Linear's uniform(-1/sqrt(fan_in), +1/sqrt(fan_in)).
    ks = jax.random.split(key, 6)

    def lin(kw, kb, fan_in, fan_out):
        bound = 1.0 / jnp.sqrt(fan_in)
        # stored as [in, out] (transposed vs torch's [out, in]) so kernel does x @ W
        w = jax.random.uniform(kw, (fan_in, fan_out), jnp.float32, -bound, bound)
        b = jax.random.uniform(kb, (1, fan_out), jnp.float32, -bound, bound)
        return w, b

    w1, b1 = lin(ks[0], ks[1], input_dim, hidden_dim)
    w2, b2 = lin(ks[2], ks[3], hidden_dim, hidden_dim)
    w3, b3 = lin(ks[4], ks[5], hidden_dim, 1)
    return (w1, b1, w2, b2, w3, b3)


def ranking_model_ref(x, params):
    w1, b1, w2, b2, w3, b3 = params
    h1 = jnp.maximum(x @ w1 + b1, 0.0)
    h2 = jnp.maximum(h1 @ w2 + b2, 0.0)
    return h2 @ w3 + b3


if __name__ == "__main__":
    key = jax.random.PRNGKey(0)
    kx1, kx2, kp = jax.random.split(key, 3)
    params = init_params(kp)

    # Small case: B not a multiple of 8 -> exercises the partial-tile path (no padding).
    B1 = 13
    x1 = jax.random.normal(kx1, (B1, INPUT_DIM), dtype=jnp.float32)
    ref1 = ranking_model_ref(x1, params)

    out_f32 = jax.block_until_ready(ranking_model_forward(x1, params, use_bf16=False))
    assert out_f32.shape == (B1, 1)
    assert jnp.allclose(out_f32, ref1, atol=1e-5, rtol=1e-5)

    out_bf16 = jax.block_until_ready(ranking_model_forward(x1, params, use_bf16=True))
    assert out_bf16.shape == (B1, 1)
    assert jnp.allclose(out_bf16, ref1, atol=5e-2, rtol=5e-2)

    # Multi-tile case with a partial last tile (grid > 1), still small shapes.
    B2 = 300
    x2 = jax.random.normal(kx2, (B2, INPUT_DIM), dtype=jnp.float32)
    ref2 = ranking_model_ref(x2, params)
    out2 = jax.block_until_ready(
        ranking_model_forward(x2, params, tile_b=256, use_bf16=True))
    assert out2.shape == (B2, 1)
    assert jnp.allclose(out2, ref2, atol=5e-2, rtol=5e-2)

    print("KERNEL_OK")
</pallas_src>

<mosaic_0001>
module attributes {stable_mosaic.version = 11 : i64} {
  func.func @_mlp_kernel(%arg0: i32, %arg1: memref<256x50xf32, #tpu.memory_space<vmem>>, %arg2: memref<50x64xf32, #tpu.memory_space<vmem>>, %arg3: memref<1x64xf32, #tpu.memory_space<vmem>>, %arg4: memref<64x64xf32, #tpu.memory_space<vmem>>, %arg5: memref<1x64xf32, #tpu.memory_space<vmem>>, %arg6: memref<1x64xf32, #tpu.memory_space<vmem>>, %arg7: memref<1x1xf32, #tpu.memory_space<smem>>, %arg8: memref<1x256xf32, #tpu.memory_space<vmem>>) attributes {dimension_semantics = [#tpu.dimension_semantics<parallel>], iteration_bounds = array<i64: 1>, scalar_prefetch = 0 : i64, scratch_operands = 0 : i64, tpu.core_type = #tpu.core_type<tc>, window_params = [{transform_indices = @transform_0, window_bounds = array<i64: 256, 50>}, {pipeline_mode = #tpu.pipeline_mode<synchronous>, transform_indices = @transform_1, window_bounds = array<i64: 50, 64>}, {pipeline_mode = #tpu.pipeline_mode<synchronous>, transform_indices = @transform_2, window_bounds = array<i64: 1, 64>}, {pipeline_mode = #tpu.pipeline_mode<synchronous>, transform_indices = @transform_3, window_bounds = array<i64: 64, 64>}, {pipeline_mode = #tpu.pipeline_mode<synchronous>, transform_indices = @transform_4, window_bounds = array<i64: 1, 64>}, {pipeline_mode = #tpu.pipeline_mode<synchronous>, transform_indices = @transform_5, window_bounds = array<i64: 1, 64>}, {transform_indices = @transform_6, window_bounds = array<i64: 1, 1>}, {transform_indices = @transform_7, window_bounds = array<i64: 1, 256>}]} {
    %c0 = arith.constant 0 : index
    %c0_0 = arith.constant 0 : index
    %0 = vector.load %arg2[%c0, %c0_0] : memref<50x64xf32, #tpu.memory_space<vmem>>, vector<50x64xf32>
    %c0_1 = arith.constant 0 : index
    %c0_2 = arith.constant 0 : index
    %1 = vector.load %arg3[%c0_1, %c0_2] : memref<1x64xf32, #tpu.memory_space<vmem>>, vector<1x64xf32>
    %c0_3 = arith.constant 0 : index
    %c0_4 = arith.constant 0 : index
    %2 = vector.load %arg4[%c0_3, %c0_4] : memref<64x64xf32, #tpu.memory_space<vmem>>, vector<64x64xf32>
    %c0_5 = arith.constant 0 : index
    %c0_6 = arith.constant 0 : index
    %3 = vector.load %arg5[%c0_5, %c0_6] : memref<1x64xf32, #tpu.memory_space<vmem>>, vector<1x64xf32>
    %c0_7 = arith.constant 0 : index
    %c0_8 = arith.constant 0 : index
    %4 = vector.load %arg6[%c0_7, %c0_8] : memref<1x64xf32, #tpu.memory_space<vmem>>, vector<1x64xf32>
    %c0_9 = arith.constant 0 : index
    %c0_10 = arith.constant 0 : index
    %5 = memref.load %arg7[%c0_9, %c0_10] : memref<1x1xf32, #tpu.memory_space<smem>>
    %c0_11 = arith.constant 0 : index
    %c0_12 = arith.constant 0 : index
    %6 = vector.load %arg1[%c0_11, %c0_12] : memref<256x50xf32, #tpu.memory_space<vmem>>, vector<256x50xf32>
    %cst = arith.constant dense<0.000000e+00> : vector<256x64xf32>
    %7 = tpu.matmul %6, %0, %cst {dimension_numbers = #tpu.dot_dimension_numbers<[1], [0], [0], [1], [0, 0, 1, 1], [], []>} : vector<256x50xf32>, vector<50x64xf32>, vector<256x64xf32> -> vector<256x64xf32>
    %8 = vector.broadcast %1 : vector<1x64xf32> to vector<256x64xf32>
    %9 = arith.addf %7, %8 : vector<256x64xf32>
    %cst_13 = arith.constant 0.000000e+00 : f32
    %10 = vector.broadcast %cst_13 : f32 to vector<256x64xf32>
    %11 = arith.maximumf %9, %10 : vector<256x64xf32>
    %cst_14 = arith.constant dense<0.000000e+00> : vector<256x64xf32>
    %12 = tpu.matmul %11, %2, %cst_14 {dimension_numbers = #tpu.dot_dimension_numbers<[1], [0], [0], [1], [0, 0, 1, 1], [], []>} : vector<256x64xf32>, vector<64x64xf32>, vector<256x64xf32> -> vector<256x64xf32>
    %13 = vector.broadcast %3 : vector<1x64xf32> to vector<256x64xf32>
    %14 = arith.addf %12, %13 : vector<256x64xf32>
    %cst_15 = arith.constant 0.000000e+00 : f32
    %15 = vector.broadcast %cst_15 : f32 to vector<256x64xf32>
    %16 = arith.maximumf %14, %15 : vector<256x64xf32>
    %17 = vector.broadcast %4 : vector<1x64xf32> to vector<256x64xf32>
    %18 = arith.mulf %16, %17 : vector<256x64xf32>
    %cst_16 = arith.constant dense<0.000000e+00> : vector<256xf32>
    %19 = vector.multi_reduction <add>, %18, %cst_16 [1] : vector<256x64xf32> to vector<256xf32>
    %20 = vector.broadcast %5 : f32 to vector<256xf32>
    %21 = arith.addf %19, %20 : vector<256xf32>
    %22 = vector.shape_cast %21 : vector<256xf32> to vector<1x256xf32>
    %c0_17 = arith.constant 0 : index
    %c0_18 = arith.constant 0 : index
    %23 = vector.load %arg8[%c0_17, %c0_18] : memref<1x256xf32, #tpu.memory_space<vmem>>, vector<1x256xf32>
    tpu.vector_store %arg8[%c0_17, %c0_18], %22 {strides = array<i32>} : memref<1x256xf32, #tpu.memory_space<vmem>>, vector<1x256xf32>,
    return
  }
  func.func @transform_0(%arg0: i32) -> (i32, i32) {
    %c0_i32 = arith.constant 0 : i32
    %c0_i32_0 = arith.constant 0 : i32
    return %arg0, %c0_i32 : i32, i32
  }
  func.func @transform_1(%arg0: i32) -> (i32, i32) {
    %c0_i32 = arith.constant 0 : i32
    %c0_i32_0 = arith.constant 0 : i32
    %c0_i32_1 = arith.constant 0 : i32
    return %c0_i32, %c0_i32_0 : i32, i32
  }
  func.func @transform_2(%arg0: i32) -> (i32, i32) {
    %c0_i32 = arith.constant 0 : i32
    %c0_i32_0 = arith.constant 0 : i32
    %c0_i32_1 = arith.constant 0 : i32
    return %c0_i32, %c0_i32_0 : i32, i32
  }
  func.func @transform_3(%arg0: i32) -> (i32, i32) {
    %c0_i32 = arith.constant 0 : i32
    %c0_i32_0 = arith.constant 0 : i32
    %c0_i32_1 = arith.constant 0 : i32
    return %c0_i32, %c0_i32_0 : i32, i32
  }
  func.func @transform_4(%arg0: i32) -> (i32, i32) {
    %c0_i32 = arith.constant 0 : i32
    %c0_i32_0 = arith.constant 0 : i32
    %c0_i32_1 = arith.constant 0 : i32
    return %c0_i32, %c0_i32_0 : i32, i32
  }
  func.func @transform_5(%arg0: i32) -> (i32, i32) {
    %c0_i32 = arith.constant 0 : i32
    %c0_i32_0 = arith.constant 0 : i32
    %c0_i32_1 = arith.constant 0 : i32
    return %c0_i32, %c0_i32_0 : i32, i32
  }
  func.func @transform_6(%arg0: i32) -> (i32, i32) {
    %c0_i32 = arith.constant 0 : i32
    %c0_i32_0 = arith.constant 0 : i32
    %c0_i32_1 = arith.constant 0 : i32
    return %c0_i32, %c0_i32_0 : i32, i32
  }
  func.func @transform_7(%arg0: i32) -> (i32, i32) {
    %c0_i32 = arith.constant 0 : i32
    %c0_i32_0 = arith.constant 0 : i32
    return %arg0, %c0_i32 : i32, i32
  }
}

</mosaic_0001>

<bundles_post_ra>
// kernel: tpu_custom_call.1
= control target key start
LH: loop header
LB: loop body
LE: loop exit
PB: predicated region body
PF: predicated region fallthrough
CT: control target
= control target key end

     0   :  { %13 = vsyncpa [#allocation4], 0  ;;  %s5578_s0 = inlined_call_operand.hbm [shape: f32[13,50], index: 0, kind: input, shape index: {}]   ;;  %s5579_s1 = inlined_call_operand.hbm [shape: f32[50,64], index: 1, kind: input, shape index: {}]   ;;  %s5580_s2 = inlined_call_operand.vmem [shape: f32[1,64], index: 2, kind: input, shape index: {}]   ;;  %s5581_s3 = inlined_call_operand.hbm [shape: f32[64,64], index: 3, kind: input, shape index: {}]   ;;  %s5582_s4 = inlined_call_operand.vmem [shape: f32[1,64], index: 4, kind: input, shape index: {}]   ;;  %s5583_s5 = inlined_call_operand.vmem [shape: f32[1,64], index: 5, kind: input, shape index: {}]   ;;  %s5584_s6 = inlined_call_operand.<no memory space> [shape: f32[1,1], index: 6, kind: input, shape index: {}]   ;;  %s5585_s7 = inlined_call_operand.hbm [shape: f32[1,256], index: 7, kind: output, shape index: {}]  }
   0x1   :  { %14 = vsyncpa [#allocation7], 0 }
   0x2   :  { %15 = vsyncpa [#allocation5], 0 }
   0x3   :  { %20 = vsyncadd [#allocation4], 3840  ;;  %s4363_s24 = smov [#allocation6]   ;;  %s4364_s26 = smov [#allocation3]  }
   0x4   :  { %s33_s25 = sshll.u32 %s4363_s24, 4  ;;  %s21_s27 = sshll.u32 %s4364_s26, 4  ;;  %s34_s25 = int_to_ptr.vmem [resolvable:$true] %s33_s25  ;;  %s4411_s27 = int_to_ptr.vmem [resolvable:$true] %s21_s27 }
   0x5   :  { %s4269_s30 = scalar_lea.hbm %s5579_s1, 896 }
   0x6   :  { %p4270_p0 = scmp.ne.s32.totalorder %s5579_s1, %s4269_s30  ;;  %p4273_p1 = scmp.lt.u32.totalorder %s4269_s30, %s5579_s1 }
   0x8   :  { %p4275_p2 = pnand %p4273_p1, %p4270_p0 }
   0xa   :  { %4278 = shalt.err (!%p4275_p2)
}
   0xb   :  { %s4279_s12 = scalar_lea.vmem %s34_s25, 896  ;;  %p4284_p4 = scmp.lt.s32.totalorder %s34_s25, %s34_s25 }
   0xc   :  { %p4280_p3 = scmp.ne.s32.totalorder %s34_s25, %s4279_s12  ;;  %p4285_p5 = scmp.lt.s32.totalorder %s4279_s12, %s4279_s12 }
   0xe   :  { %p4286_p6 = por %p4285_p5, %p4284_p4 }
  0x10   :  { %p4287_p7 = pnand %p4286_p6, %p4280_p3 }
  0x12   :  { %4290 = shalt.err (!%p4287_p7)
}
  0x13   :  { %s4365_s13 = smov 128   ;;  %s4366_s14 = smov 8  }
  0x14   :  { %39 = dma.hbm_to_vmem [thread:$0]  %s5579_s1, 896, %s34_s25, [#allocation7], %s4365_s13, %s4365_s13, %s4366_s14  }
  0x15   :  { %s4291_s19 = scalar_lea.hbm %s5578_s0, 256 }
  0x16   :  { %p4292_p8 = scmp.ne.s32.totalorder %s5578_s0, %s4291_s19  ;;  %p4295_p9 = scmp.lt.u32.totalorder %s4291_s19, %s5578_s0 }
  0x18   :  { %p4297_p10 = pnand %p4295_p9, %p4292_p8 }
  0x1a   :  { %4300 = shalt.err (!%p4297_p10)
}
  0x1b   :  { %s4301_s24 = scalar_lea.vmem %s4411_s27, 256  ;;  %s4305_s1 = scalar_lea.vmem %s4411_s27, 4096 }
  0x1c   :  { %p4302_p11 = scmp.ne.s32.totalorder %s4411_s27, %s4301_s24  ;;  %p4306_p12 = scmp.lt.s32.totalorder %s4411_s27, %s4411_s27 }
  0x1d   :  { %p4307_p13 = scmp.lt.s32.totalorder %s4305_s1, %s4301_s24 }
  0x1f   :  { %p4308_p0 = por %p4307_p13, %p4306_p12 }
  0x21   :  { %p4309_p1 = pnand %p4308_p0, %p4302_p11 }
  0x23   :  { %4312 = shalt.err (!%p4309_p1)
}
  0x24   :  { %27 = dma.hbm_to_vmem [thread:$0]  %s5578_s0, 256, %s4411_s27, [#allocation4], %s4365_s13, %s4365_s13, %s4366_s14  }
  0x25   :  { %s4367_s28 = smov [#allocation8]   ;;  %s4313_s9 = scalar_lea.hbm %s5581_s3, 1024 }
  0x26   :  { %s47_s29 = sshll.u32 %s4367_s28, 4  ;;  %p4314_p2 = scmp.ne.s32.totalorder %s5581_s3, %s4313_s9  ;;  %s48_s29 = int_to_ptr.vmem [resolvable:$true] %s47_s29 }
  0x27   :  { %p4317_p3 = scmp.lt.u32.totalorder %s4313_s9, %s5581_s3 }
  0x29   :  { %p4319_p4 = pnand %p4317_p3, %p4314_p2 }
  0x2b   :  { %4322 = shalt.err (!%p4319_p4)
}
  0x2c   :  { %s4323_s16 = scalar_lea.vmem %s48_s29, 1024  ;;  %p4328_p6 = scmp.lt.s32.totalorder %s48_s29, %s48_s29 }
  0x2d   :  { %p4324_p5 = scmp.ne.s32.totalorder %s48_s29, %s4323_s16  ;;  %p4329_p7 = scmp.lt.s32.totalorder %s4323_s16, %s4323_s16 }
  0x2f   :  { %p4330_p8 = por %p4329_p7, %p4328_p6 }
  0x31   :  { %p4331_p9 = pnand %p4330_p8, %p4324_p5 }
  0x33   :  { %4334 = shalt.err (!%p4331_p9)
}
  0x34   :  { %53 = dma.hbm_to_vmem [thread:$0]  %s5581_s3, 1024, %s48_s29, [#allocation7], %s4365_s13, %s4365_s13, %s4366_s14  }
  0x35   :  { %4357 = dma.done.wait [#allocation4], 4096  }
  0x36   :  { %4358 = vsyncadd [#allocation4], 4294963200 }
  0x37   :  { %4359 = dma.done.wait [#allocation7], 1920  }
  0x38   :  { %4360 = vsyncadd [#allocation7], 4294965376  ;;  %v69_v0 = vld [vmem:[#allocation6] sm:$0xff]  ;;  %v70_v1 = vld [vmem:[#allocation6 + $0x8] sm:$0xff]  ;;  %vm126_vm0 = vcmask 408576   ;;  %vm223_vm1 = vcmask 1041408  }
  0x39   :  { %v71_v2 = vld [vmem:[#allocation6 + $0x10] sm:$0xff]  ;;  %v4231_v3 = vpack.c.bf16 %v70_v1, %v69_v0  ;;  %v72_v4 = vld [vmem:[#allocation6 + $0x18] sm:$0xff]  ;;  %v73_v6 = vld [vmem:[#allocation6 + $0x20] sm:$0xff]  ;;  %vm490_vm2 = vcmask 523264   ;;  %vm3742_vm3 = vcmask 130112   ;;  %vm3749_vm4 = vcmask 195712  }
  0x3a   :  { %v4235_v5 = vpack.c.bf16 %v72_v4, %v71_v2  ;;  %v74_v7 = vld [vmem:[#allocation6 + $0x28] sm:$0xff]  ;;  %v88_v8 = vld [vmem:[#allocation3] sm:$0xff]  ;;  %v75_v10 = vld [vmem:[#allocation6 + $0x30] sm:$0x3]  ;;  %vm3756_vm5 = vcmask 261312   ;;  %vm3763_vm6 = vcmask 326912  }
  0x3b   :  { %4232 = vmatprep.subr.bf16.mxu0 %v4231_v3  ;;  %4119 = vmatprep.mubr.msk.f32.mxu0 %vm126_vm0, %v88_v8  ;;  %v4239_v9 = vpack.c.bf16 %v74_v7, %v73_v6  ;;  %v77_v11 = vld [vmem:[#allocation8] sm:$0xff]  ;;  %v78_v12 = vld [vmem:[#allocation8 + $0x8] sm:$0xff]  ;;  %v79_v13 = vld [vmem:[#allocation8 + $0x10] sm:$0xff]  ;;  %vm3770_vm7 = vcmask 392512   ;;  %vm3777_vm8 = vcmask 458112   ;;  %vm3784_vm9 = vcmask 523712  }
  0x3c   :  { %4234 = vmatpush3.bf16.msra.mxu0 %v4231_v3  ;;  %v89_v14 = vld [vmem:[#allocation3 + $0x8] sm:$0xff]  ;;  %v4243_v15 = vpack.c.bf16 %v78_v12, %v77_v11  ;;  %v80_v16 = vld [vmem:[#allocation8 + $0x18] sm:$0xff]  ;;  %v81_v19 = vld [vmem:[#allocation8 + $0x20] sm:$0xff]  ;;  %vm3791_vm10 = vcmask 589312   ;;  %vm3798_vm11 = vcmask 654912   ;;  %vm3805_vm12 = vcmask 720512  }
  0x3d   :  { %4236 = vmatprep.subr.bf16.mxu0 %v4235_v5  ;;  %v90_v17 = vld [vmem:[#allocation3 + $0x10] sm:$0xff]  ;;  %v4247_v18 = vpack.c.bf16 %v80_v16, %v79_v13  ;;  %v82_v20 = vld [vmem:[#allocation8 + $0x28] sm:$0xff]  ;;  %v91_v21 = vld [vmem:[#allocation3 + $0x18] sm:$0xff]  ;;  %vm3812_vm13 = vcmask 786112   ;;  %vm3819_vm14 = vcmask 851712   ;;  %vm3826_vm15 = vcmask 917312  }
  0x3e   :  { %4244 = vmatprep.subr.bf16.mxu1 %v4243_v15  ;;  %v4251_v22 = vpack.c.bf16 %v82_v20, %v81_v19  ;;  %v92_v23 = vld [vmem:[#allocation3 + $0x20] sm:$0xff]  ;;  %v93_v24 = vld [vmem:[#allocation3 + $0x28] sm:$0xff]  ;;  %v94_v25 = vld [vmem:[#allocation3 + $0x30] sm:$0xff] }
  0x3f   :  { %4246 = vmatpush3.bf16.msra.mxu1 %v4243_v15  ;;  %v95_v26 = vld [vmem:[#allocation3 + $0x38] sm:$0xff]  ;;  %v96_v27 = vld [vmem:[#allocation3 + $0x40] sm:$0xff]  ;;  %v97_v28 = vld [vmem:[#allocation3 + $0x48] sm:$0xff] }
  0x40   :  { %4238 = vmatpush3.bf16.msra.mxu0 %v4235_v5  ;;  %4248 = vmatprep.subr.bf16.mxu1 %v4247_v18  ;;  %v98_v29 = vld [vmem:[#allocation3 + $0x50] sm:$0xff]  ;;  %v99_v30 = vld [vmem:[#allocation3 + $0x58] sm:$0xff]  ;;  %v100_v31 = vld [vmem:[#allocation3 + $0x60] sm:$0xff] }
  0x41   :  { %4240 = vmatprep.subr.bf16.mxu0 %v4239_v9  ;;  %v101_v32 = vld [vmem:[#allocation3 + $0x68] sm:$0xff]  ;;  %v102_v33 = vld [vmem:[#allocation3 + $0x70] sm:$0xff]  ;;  %v103_v34 = vld [vmem:[#allocation3 + $0x78] sm:$0xff] }
  0x42   :  { %v104_v35 = vld [vmem:[#allocation3 + $0x80] sm:$0xff]  ;;  %v105_v36 = vld [vmem:[#allocation3 + $0x88] sm:$0xff]  ;;  %v106_v37 = vld [vmem:[#allocation3 + $0x90] sm:$0xff] }
  0x43   :  { %4250 = vmatpush3.bf16.msra.mxu1 %v4247_v18  ;;  %v107_v38 = vld [vmem:[#allocation3 + $0x98] sm:$0xff]  ;;  %v108_v39 = vld [vmem:[#allocation3 + $0xa0] sm:$0xff]  ;;  %v109_v40 = vld [vmem:[#allocation3 + $0xa8] sm:$0xff] }
  0x44   :  { %4242 = vmatpush3.bf16.msra.mxu0 %v4239_v9  ;;  %4252 = vmatprep.subr.bf16.mxu1 %v4251_v22  ;;  %v110_v41 = vld [vmem:[#allocation3 + $0xb0] sm:$0xff]  ;;  %v111_v42 = vld [vmem:[#allocation3 + $0xb8] sm:$0xff]  ;;  %v112_v43 = vld [vmem:[#allocation3 + $0xc0] sm:$0xff] }
  0x45   :  { %4117 = vmatprep.subr.msk.mxu0 %vm223_vm1, %v75_v10  ;;  %v113_v44 = vld [vmem:[#allocation3 + $0xc8] sm:$0xff]  ;;  %v114_v45 = vld [vmem:[#allocation3 + $0xd0] sm:$0xff]  ;;  %v115_v46 = vld [vmem:[#allocation3 + $0xd8] sm:$0xff] }
  0x46   :  { %v116_v47 = vld [vmem:[#allocation3 + $0xe0] sm:$0xff]  ;;  %v117_v48 = vld [vmem:[#allocation3 + $0xe8] sm:$0xff]  ;;  %v118_v49 = vld [vmem:[#allocation3 + $0xf0] sm:$0xff] }
  0x47   :  { %4254 = vmatpush3.bf16.msra.mxu1 %v4251_v22  ;;  %v119_v50 = vld [vmem:[#allocation3 + $0xf8] sm:$0xff]  ;;  %v83_v51 = vld [vmem:[#allocation8 + $0x30] sm:$0xff]  ;;  %v84_v52 = vld [vmem:[#allocation8 + $0x38] sm:$0xff] }
  0x48   :  { %4118 = vmatpush3.msk.msra.mxu0 %vm223_vm1, %v75_v10  ;;  %v4255_v53 = vpack.c.bf16 %v84_v52, %v83_v51  ;;  %v4499_v54 = vld [vmem:[%s5580_s2] ss:$0 sm:$0xff]  ;;  %vm3840_vm1 = vcmask 1048512  }
  0x49   :  { %4120 = vmatmul.mubr.msk.f32.vlgmr.msra.gmra.mrb[0].mxu0 %vm126_vm0, %v89_v14 }
  0x4a   :  { %4122 = vmatprep.mubr.msk.f32.mxu0 %vm126_vm0, %v90_v17  ;;  %4256 = vmatprep.subr.bf16.mxu1 %v4255_v53 }
  0x4b   :  { %4258 = vmatpush3.bf16.msra.mxu1 %v4255_v53 }
  0x4d   :  { %4123 = vmatmul.mubr.msk.f32.gmra.mrb[2].mxu0 %vm126_vm0, %v91_v21 }
  0x4e   :  { %4125 = vmatprep.mubr.msk.f32.mxu0 %vm126_vm0, %v92_v23 }
  0x51   :  { %4126 = vmatmul.mubr.msk.f32.gmra.mrb[4].mxu0 %vm126_vm0, %v93_v24 }
  0x52   :  { %4128 = vmatprep.mubr.msk.f32.mxu0 %vm126_vm0, %v94_v25 }
  0x55   :  { %4129 = vmatmul.mubr.msk.f32.gmra.mrb[6].mxu0 %vm126_vm0, %v95_v26 }
  0x56   :  { %4131 = vmatprep.mubr.msk.f32.mxu0 %vm126_vm0, %v96_v27 }
  0x59   :  { %4132 = vmatmul.mubr.msk.f32.gmra.mrb[8].mxu0 %vm126_vm0, %v97_v28 }
  0x5a   :  { %4134 = vmatprep.mubr.msk.f32.mxu0 %vm126_vm0, %v98_v29 }
  0x5d   :  { %4135 = vmatmul.mubr.msk.f32.gmra.mrb[10].mxu0 %vm126_vm0, %v99_v30 }
  0x5e   :  { %4137 = vmatprep.mubr.msk.f32.mxu0 %vm126_vm0, %v100_v31 }
  0x61   :  { %4138 = vmatmul.mubr.msk.f32.gmra.mrb[12].mxu0 %vm126_vm0, %v101_v32 }
  0x62   :  { %4140 = vmatprep.mubr.msk.f32.mxu0 %vm126_vm0, %v102_v33 }
  0x65   :  { %4141 = vmatmul.mubr.msk.f32.gmra.mrb[14].mxu0 %vm126_vm0, %v103_v34 }
  0x66   :  { %4143 = vmatprep.mubr.msk.f32.mxu0 %vm126_vm0, %v104_v35 }
  0x69   :  { %4144 = vmatmul.mubr.msk.f32.gmra.mrb[16].mxu0 %vm126_vm0, %v105_v36 }
  0x6a   :  { %4146 = vmatprep.mubr.msk.f32.mxu0 %vm126_vm0, %v106_v37 }
  0x6d   :  { %4147 = vmatmul.mubr.msk.f32.gmra.mrb[18].mxu0 %vm126_vm0, %v107_v38 }
  0x6e   :  { %4149 = vmatprep.mubr.msk.f32.mxu0 %vm126_vm0, %v108_v39 }
  0x71   :  { %4150 = vmatmul.mubr.msk.f32.gmra.mrb[20].mxu0 %vm126_vm0, %v109_v40 }
  0x72   :  { %4152 = vmatprep.mubr.msk.f32.mxu0 %vm126_vm0, %v110_v41 }
  0x75   :  { %4153 = vmatmul.mubr.msk.f32.gmra.mrb[22].mxu0 %vm126_vm0, %v111_v42 }
  0x76   :  { %4155 = vmatprep.mubr.msk.f32.mxu0 %vm126_vm0, %v112_v43 }
  0x79   :  { %4156 = vmatmul.mubr.msk.f32.gmra.mrb[24].mxu0 %vm126_vm0, %v113_v44 }
  0x7a   :  { %4158 = vmatprep.mubr.msk.f32.mxu0 %vm126_vm0, %v114_v45 }
  0x7d   :  { %4159 = vmatmul.mubr.msk.f32.gmra.mrb[26].mxu0 %vm126_vm0, %v115_v46 }
  0x7e   :  { %4161 = vmatprep.mubr.msk.f32.mxu0 %vm126_vm0, %v116_v47 }
  0x81   :  { %4162 = vmatmul.mubr.msk.f32.gmra.mrb[28].mxu0 %vm126_vm0, %v117_v48 }
  0x82   :  { %4164 = vmatprep.mubr.msk.f32.mxu0 %vm126_vm0, %v118_v49 }
  0x85   :  { %4165 = vmatmul.mubr.msk.f32.gmra.mrb[30].mxu0 %vm126_vm0, %v119_v50  ;;  %vm3833_vm0 = vcmask 982912  }
 0x11c   :  { %v4121_v55 = vpop.f32.mrb[0].mxu0 }
 0x11d   :  { %v299_v56 = vadd.f32 %v4121_v55, %v4499_v54  ;;  %v293_v57 = vpop.f32.mrb[1].mxu0 }
 0x11e   :  { %v294_v58 = vadd.f32 %v4499_v54, %v293_v57 }
 0x11f   :  { %v453_v61 = vmax.f32 %v299_v56, 0.0 }
 0x120   :  { %v452_v59 = vmax.f32 %v294_v58, 0.0  ;;  %v4124_v60 = vpop.f32.mrb[2].mxu0 }
 0x121   :  { %v309_v62 = vadd.f32 %v4124_v60, %v4499_v54  ;;  %v303_v63 = vpop.f32.mrb[3].mxu0 }
 0x122   :  { %v304_v0 = vadd.f32 %v4499_v54, %v303_v63  ;;  %4183 = vmatprep.mubr.msk.f32.mxu1 %vm490_vm2, %v452_v59 }
 0x123   :  { %4184 = vmatmul.mubr.msk.f32.vlgmr.msra.gmra.mrb[0].mxu1 %vm490_vm2, %v453_v61  ;;  %v455_v3 = vmax.f32 %v309_v62, 0.0 }
 0x124   :  { %v454_v1 = vmax.f32 %v304_v0, 0.0  ;;  %v4127_v2 = vpop.f32.mrb[4].mxu0 }
 0x125   :  { %v319_v4 = vadd.f32 %v4127_v2, %v4499_v54  ;;  %v313_v5 = vpop.f32.mrb[5].mxu0 }
 0x126   :  { %v314_v6 = vadd.f32 %v4499_v54, %v313_v5  ;;  %4186 = vmatprep.mubr.msk.f32.mxu1 %vm490_vm2, %v454_v1 }
 0x127   :  { %v457_v7 = vmax.f32 %v319_v4, 0.0  ;;  %4187 = vmatmul.mubr.msk.f32.gmra.mrb[2].mxu1 %vm490_vm2, %v455_v3 }
 0x128   :  { %v456_v8 = vmax.f32 %v314_v6, 0.0  ;;  %v4130_v9 = vpop.f32.mrb[6].mxu0 }
 0x129   :  { %v329_v10 = vadd.f32 %v4130_v9, %v4499_v54  ;;  %v323_v11 = vpop.f32.mrb[7].mxu0 }
 0x12a   :  { %v324_v12 = vadd.f32 %v4499_v54, %v323_v11  ;;  %4189 = vmatprep.mubr.msk.f32.mxu1 %vm490_vm2, %v456_v8 }
 0x12b   :  { %v459_v13 = vmax.f32 %v329_v10, 0.0  ;;  %4190 = vmatmul.mubr.msk.f32.gmra.mrb[4].mxu1 %vm490_vm2, %v457_v7 }
 0x12c   :  { %v458_v14 = vmax.f32 %v324_v12, 0.0  ;;  %v4133_v15 = vpop.f32.mrb[8].mxu0 }
 0x12d   :  { %v339_v16 = vadd.f32 %v4133_v15, %v4499_v54  ;;  %v333_v17 = vpop.f32.mrb[9].mxu0 }
 0x12e   :  { %v334_v18 = vadd.f32 %v4499_v54, %v333_v17  ;;  %4192 = vmatprep.mubr.msk.f32.mxu1 %vm490_vm2, %v458_v14 }
 0x12f   :  { %v461_v19 = vmax.f32 %v339_v16, 0.0  ;;  %4193 = vmatmul.mubr.msk.f32.gmra.mrb[6].mxu1 %vm490_vm2, %v459_v13 }
 0x130   :  { %v460_v20 = vmax.f32 %v334_v18, 0.0  ;;  %v4136_v21 = vpop.f32.mrb[10].mxu0 }
 0x131   :  { %v349_v22 = vadd.f32 %v4136_v21, %v4499_v54  ;;  %v343_v23 = vpop.f32.mrb[11].mxu0 }
 0x132   :  { %v344_v24 = vadd.f32 %v4499_v54, %v343_v23  ;;  %4195 = vmatprep.mubr.msk.f32.mxu1 %vm490_vm2, %v460_v20 }
 0x133   :  { %v463_v25 = vmax.f32 %v349_v22, 0.0  ;;  %4196 = vmatmul.mubr.msk.f32.gmra.mrb[8].mxu1 %vm490_vm2, %v461_v19 }
 0x134   :  { %v462_v26 = vmax.f32 %v344_v24, 0.0  ;;  %v4139_v27 = vpop.f32.mrb[12].mxu0  ;;  %v4568_v24 = vld [vmem:[%s5582_s4] ss:$0 sm:$0xff] }
 0x135   :  { %v359_v28 = vadd.f32 %v4139_v27, %v4499_v54  ;;  %v353_v29 = vpop.f32.mrb[13].mxu0 }
 0x136   :  { %v354_v30 = vadd.f32 %v4499_v54, %v353_v29  ;;  %4198 = vmatprep.mubr.msk.f32.mxu1 %vm490_vm2, %v462_v26 }
 0x137   :  { %v465_v31 = vmax.f32 %v359_v28, 0.0  ;;  %4199 = vmatmul.mubr.msk.f32.gmra.mrb[10].mxu1 %vm490_vm2, %v463_v25 }
 0x138   :  { %v464_v32 = vmax.f32 %v354_v30, 0.0  ;;  %v4142_v33 = vpop.f32.mrb[14].mxu0 }
 0x139   :  { %v369_v34 = vadd.f32 %v4142_v33, %v4499_v54  ;;  %v363_v35 = vpop.f32.mrb[15].mxu0 }
 0x13a   :  { %v364_v36 = vadd.f32 %v4499_v54, %v363_v35  ;;  %4201 = vmatprep.mubr.msk.f32.mxu1 %vm490_vm2, %v464_v32 }
 0x13b   :  { %v467_v37 = vmax.f32 %v369_v34, 0.0  ;;  %4202 = vmatmul.mubr.msk.f32.gmra.mrb[12].mxu1 %vm490_vm2, %v465_v31 }
 0x13c   :  { %v466_v38 = vmax.f32 %v364_v36, 0.0  ;;  %v4145_v39 = vpop.f32.mrb[16].mxu0 }
 0x13d   :  { %v379_v40 = vadd.f32 %v4145_v39, %v4499_v54  ;;  %v373_v41 = vpop.f32.mrb[17].mxu0 }
 0x13e   :  { %v374_v42 = vadd.f32 %v4499_v54, %v373_v41  ;;  %4204 = vmatprep.mubr.msk.f32.mxu1 %vm490_vm2, %v466_v38 }
 0x13f   :  { %v469_v43 = vmax.f32 %v379_v40, 0.0  ;;  %4205 = vmatmul.mubr.msk.f32.gmra.mrb[14].mxu1 %vm490_vm2, %v467_v37 }
 0x140   :  { %v468_v44 = vmax.f32 %v374_v42, 0.0  ;;  %v4148_v45 = vpop.f32.mrb[18].mxu0 }
 0x141   :  { %v389_v46 = vadd.f32 %v4148_v45, %v4499_v54  ;;  %v383_v47 = vpop.f32.mrb[19].mxu0 }
 0x142   :  { %v384_v48 = vadd.f32 %v4499_v54, %v383_v47  ;;  %4207 = vmatprep.mubr.msk.f32.mxu1 %vm490_vm2, %v468_v44 }
 0x143   :  { %v471_v49 = vmax.f32 %v389_v46, 0.0  ;;  %4208 = vmatmul.mubr.msk.f32.gmra.mrb[16].mxu1 %vm490_vm2, %v469_v43 }
 0x144   :  { %v470_v50 = vmax.f32 %v384_v48, 0.0  ;;  %v4151_v51 = vpop.f32.mrb[20].mxu0 }
 0x145   :  { %v399_v52 = vadd.f32 %v4151_v51, %v4499_v54  ;;  %v393_v53 = vpop.f32.mrb[21].mxu0 }
 0x146   :  { %v394_v55 = vadd.f32 %v4499_v54, %v393_v53  ;;  %4210 = vmatprep.mubr.msk.f32.mxu1 %vm490_vm2, %v470_v50 }
 0x147   :  { %v473_v56 = vmax.f32 %v399_v52, 0.0  ;;  %4211 = vmatmul.mubr.msk.f32.gmra.mrb[18].mxu1 %vm490_vm2, %v471_v49 }
 0x148   :  { %v472_v57 = vmax.f32 %v394_v55, 0.0  ;;  %v4154_v58 = vpop.f32.mrb[22].mxu0 }
 0x149   :  { %v409_v59 = vadd.f32 %v4154_v58, %v4499_v54  ;;  %v403_v60 = vpop.f32.mrb[23].mxu0 }
 0x14a   :  { %v404_v61 = vadd.f32 %v4499_v54, %v403_v60  ;;  %4213 = vmatprep.mubr.msk.f32.mxu1 %vm490_vm2, %v472_v57 }
 0x14b   :  { %v475_v62 = vmax.f32 %v409_v59, 0.0  ;;  %4214 = vmatmul.mubr.msk.f32.gmra.mrb[20].mxu1 %vm490_vm2, %v473_v56 }
 0x14c   :  { %v474_v63 = vmax.f32 %v404_v61, 0.0  ;;  %v4157_v0 = vpop.f32.mrb[24].mxu0 }
 0x14d   :  { %v419_v1 = vadd.f32 %v4157_v0, %v4499_v54  ;;  %v413_v2 = vpop.f32.mrb[25].mxu0 }
 0x14e   :  { %v414_v3 = vadd.f32 %v4499_v54, %v413_v2  ;;  %4216 = vmatprep.mubr.msk.f32.mxu1 %vm490_vm2, %v474_v63 }
 0x14f   :  { %v477_v4 = vmax.f32 %v419_v1, 0.0  ;;  %4217 = vmatmul.mubr.msk.f32.gmra.mrb[22].mxu1 %vm490_vm2, %v475_v62 }
 0x150   :  { %v476_v5 = vmax.f32 %v414_v3, 0.0  ;;  %v4160_v6 = vpop.f32.mrb[26].mxu0 }
 0x151   :  { %v429_v7 = vadd.f32 %v4160_v6, %v4499_v54  ;;  %v423_v8 = vpop.f32.mrb[27].mxu0 }
 0x152   :  { %v424_v9 = vadd.f32 %v4499_v54, %v423_v8  ;;  %4219 = vmatprep.mubr.msk.f32.mxu1 %vm490_vm2, %v476_v5 }
 0x153   :  { %v479_v10 = vmax.f32 %v429_v7, 0.0  ;;  %4220 = vmatmul.mubr.msk.f32.gmra.mrb[24].mxu1 %vm490_vm2, %v477_v4 }
 0x154   :  { %v478_v11 = vmax.f32 %v424_v9, 0.0  ;;  %v4163_v12 = vpop.f32.mrb[28].mxu0 }
 0x155   :  { %v439_v13 = vadd.f32 %v4163_v12, %v4499_v54  ;;  %v433_v14 = vpop.f32.mrb[29].mxu0 }
 0x156   :  { %4222 = vmatprep.mubr.msk.f32.mxu1 %vm490_vm2, %v478_v11  ;;  %v434_v15 = vadd.f32 %v4499_v54, %v433_v14 }
 0x157   :  { %4223 = vmatmul.mubr.msk.f32.gmra.mrb[26].mxu1 %vm490_vm2, %v479_v10  ;;  %v481_v16 = vmax.f32 %v439_v13, 0.0 }
 0x158   :  { %v480_v17 = vmax.f32 %v434_v15, 0.0  ;;  %v4166_v18 = vpop.f32.mrb[30].mxu0 }
 0x159   :  { %v449_v19 = vadd.f32 %v4166_v18, %v4499_v54  ;;  %v443_v20 = vpop.f32.mrb[31].mxu0 }
 0x15a   :  { %4225 = vmatprep.mubr.msk.f32.mxu1 %vm490_vm2, %v480_v17  ;;  %v444_v21 = vadd.f32 %v4499_v54, %v443_v20  ;;  %v4575_v54 = vld [vmem:[%s5583_s5] ss:$0 sm:$0xff] }
 0x15b   :  { %v483_v22 = vmax.f32 %v449_v19, 0.0  ;;  %4226 = vmatmul.mubr.msk.f32.gmra.mrb[28].mxu1 %vm490_vm2, %v481_v16 }
 0x15c   :  { %v482_v23 = vmax.f32 %v444_v21, 0.0 }
 0x15e   :  { %4228 = vmatprep.mubr.msk.f32.mxu1 %vm490_vm2, %v482_v23 }
 0x15f   :  { %4229 = vmatmul.mubr.msk.f32.gmra.mrb[30].mxu1 %vm490_vm2, %v483_v22 }
 0x1f6   :  { %v4185_v25 = vpop.f32.mrb[0].mxu1 }
 0x1f7   :  { %v659_v26 = vadd.f32 %v4185_v25, %v4568_v24  ;;  %v653_v27 = vpop.f32.mrb[1].mxu1 }
 0x1f8   :  { %v654_v28 = vadd.f32 %v4568_v24, %v653_v27 }
 0x1f9   :  { %v813_v29 = vmax.f32 %v659_v26, 0.0 }
 0x1fa   :  { %v812_v30 = vmax.f32 %v654_v28, 0.0  ;;  %v4188_v31 = vpop.f32.mrb[2].mxu1 }
 0x1fb   :  { %v669_v32 = vadd.f32 %v4188_v31, %v4568_v24  ;;  %v663_v33 = vpop.f32.mrb[3].mxu1  ;;  %v851_v34 = vmul.f32 %v4575_v54, %v813_v29 }
 0x1fc   :  { %v664_v35 = vadd.f32 %v4568_v24, %v663_v33  ;;  %v850_v38 = vmul.f32 %v4575_v54, %v812_v30 }
 0x1fd   :  { %v815_v36 = vmax.f32 %v669_v32, 0.0  ;;  %v885_v37 = vsel %vm490_vm2, %v851_v34, 0.0 }
 0x1fe   :  { %v814_v39 = vmax.f32 %v664_v35, 0.0  ;;  %886 = vadd.xlane.f32.xlu0 %v885_v37  ;;  %v4191_v40 = vpop.f32.mrb[4].mxu1  ;;  %v882_v47 = vsel %vm490_vm2, %v850_v38, 0.0 }
 0x1ff   :  { %v679_v41 = vadd.f32 %v4191_v40, %v4568_v24  ;;  %v673_v42 = vpop.f32.mrb[5].mxu1  ;;  %v853_v43 = vmul.f32 %v4575_v54, %v815_v36 }
 0x200   :  { %v674_v44 = vadd.f32 %v4568_v24, %v673_v42  ;;  %v852_v48 = vmul.f32 %v4575_v54, %v814_v39 }
 0x201   :  { %v817_v45 = vmax.f32 %v679_v41, 0.0  ;;  %v891_v46 = vsel %vm490_vm2, %v853_v43, 0.0 }
 0x202   :  { %v816_v49 = vmax.f32 %v674_v44, 0.0  ;;  %892 = vadd.xlane.f32.xlu1 %v891_v46  ;;  %883 = vadd.xlane.f32.xlu0 %v882_v47  ;;  %v4194_v50 = vpop.f32.mrb[6].mxu1  ;;  %v888_v57 = vsel %vm490_vm2, %v852_v48, 0.0  ;;  %v4368_v46 = vmov 0  }
 0x203   :  { %v689_v51 = vadd.f32 %v4194_v50, %v4568_v24  ;;  %v683_v52 = vpop.f32.mrb[7].mxu1  ;;  %v855_v58 = vmul.f32 %v4575_v54, %v817_v45  ;;  %4267 = vset.pattern.permute.xlu1 %v4368_v46  ;;  %4268 = vset.pattern.permute.xlu0 %v4368_v46 }
 0x204   :  { %v684_v53 = vadd.f32 %v4568_v24, %v683_v52  ;;  %v854_v55 = vmul.f32 %v4575_v54, %v816_v49 }
 0x205   :  { %v819_v56 = vmax.f32 %v689_v51, 0.0  ;;  %v897_v3 = vsel %vm490_vm2, %v855_v58, 0.0 }
 0x206   :  { %v818_v59 = vmax.f32 %v684_v53, 0.0  ;;  %889 = vadd.xlane.f32.xlu1 %v888_v57  ;;  %v4197_v60 = vpop.f32.mrb[8].mxu1  ;;  %v894_v61 = vsel %vm490_vm2, %v854_v55, 0.0 }
 0x207   :  { %v699_v62 = vadd.f32 %v4197_v60, %v4568_v24  ;;  %v693_v63 = vpop.f32.mrb[9].mxu1  ;;  %895 = vadd.xlane.f32.xlu0 %v894_v61  ;;  %v857_v4 = vmul.f32 %v4575_v54, %v819_v56 }
 0x208   :  { %v694_v0 = vadd.f32 %v4568_v24, %v693_v63  ;;  %v856_v1 = vmul.f32 %v4575_v54, %v818_v59 }
 0x209   :  { %v821_v2 = vmax.f32 %v699_v62, 0.0  ;;  %v903_v13 = vsel %vm490_vm2, %v857_v4, 0.0 }
 0x20a   :  { %v820_v5 = vmax.f32 %v694_v0, 0.0  ;;  %898 = vadd.xlane.f32.xlu1 %v897_v3  ;;  %v4200_v6 = vpop.f32.mrb[10].mxu1  ;;  %v900_v7 = vsel %vm490_vm2, %v856_v1, 0.0 }
 0x20b   :  { %v709_v8 = vadd.f32 %v4200_v6, %v4568_v24  ;;  %v703_v9 = vpop.f32.mrb[11].mxu1  ;;  %901 = vadd.xlane.f32.xlu0 %v900_v7  ;;  %v859_v14 = vmul.f32 %v4575_v54, %v821_v2 }
 0x20c   :  { %v704_v10 = vadd.f32 %v4568_v24, %v703_v9  ;;  %v858_v11 = vmul.f32 %v4575_v54, %v820_v5 }
 0x20d   :  { %v823_v12 = vmax.f32 %v709_v8, 0.0  ;;  %v909_v23 = vsel %vm490_vm2, %v859_v14, 0.0 }
 0x20e   :  { %v822_v15 = vmax.f32 %v704_v10, 0.0  ;;  %904 = vadd.xlane.f32.xlu1 %v903_v13  ;;  %v4203_v16 = vpop.f32.mrb[12].mxu1  ;;  %v906_v17 = vsel %vm490_vm2, %v858_v11, 0.0 }
 0x20f   :  { %v719_v18 = vadd.f32 %v4203_v16, %v4568_v24  ;;  %v713_v19 = vpop.f32.mrb[13].mxu1  ;;  %907 = vadd.xlane.f32.xlu0 %v906_v17  ;;  %v861_v25 = vmul.f32 %v4575_v54, %v823_v12 }
 0x210   :  { %v714_v20 = vadd.f32 %v4568_v24, %v713_v19  ;;  %v860_v21 = vmul.f32 %v4575_v54, %v822_v15 }
 0x211   :  { %v825_v22 = vmax.f32 %v719_v18, 0.0  ;;  %v915_v34 = vsel %vm490_vm2, %v861_v25, 0.0 }
 0x212   :  { %v824_v26 = vmax.f32 %v714_v20, 0.0  ;;  %910 = vadd.xlane.f32.xlu1 %v909_v23  ;;  %v4206_v27 = vpop.f32.mrb[14].mxu1  ;;  %v912_v28 = vsel %vm490_vm2, %v860_v21, 0.0 }
 0x213   :  { %v729_v29 = vadd.f32 %v4206_v27, %v4568_v24  ;;  %v723_v30 = vpop.f32.mrb[15].mxu1  ;;  %913 = vadd.xlane.f32.xlu0 %v912_v28  ;;  %v863_v35 = vmul.f32 %v4575_v54, %v825_v22 }
 0x214   :  { %v724_v31 = vadd.f32 %v4568_v24, %v723_v30  ;;  %v862_v32 = vmul.f32 %v4575_v54, %v824_v26 }
 0x215   :  { %v827_v33 = vmax.f32 %v729_v29, 0.0  ;;  %v921_v44 = vsel %vm490_vm2, %v863_v35, 0.0 }
 0x216   :  { %v826_v36 = vmax.f32 %v724_v31, 0.0  ;;  %916 = vadd.xlane.f32.xlu1 %v915_v34  ;;  %v4209_v37 = vpop.f32.mrb[16].mxu1  ;;  %v918_v38 = vsel %vm490_vm2, %v862_v32, 0.0 }
 0x217   :  { %v739_v39 = vadd.f32 %v4209_v37, %v4568_v24  ;;  %v733_v40 = vpop.f32.mrb[17].mxu1  ;;  %919 = vadd.xlane.f32.xlu0 %v918_v38  ;;  %v865_v45 = vmul.f32 %v4575_v54, %v827_v33 }
 0x218   :  { %v734_v41 = vadd.f32 %v4568_v24, %v733_v40  ;;  %v864_v42 = vmul.f32 %v4575_v54, %v826_v36 }
 0x219   :  { %v829_v43 = vmax.f32 %v739_v39, 0.0  ;;  %v927_v56 = vsel %vm490_vm2, %v865_v45, 0.0 }
 0x21a   :  { %v828_v47 = vmax.f32 %v734_v41, 0.0  ;;  %922 = vadd.xlane.f32.xlu1 %v921_v44  ;;  %v4212_v48 = vpop.f32.mrb[18].mxu1  ;;  %v924_v49 = vsel %vm490_vm2, %v864_v42, 0.0 }
 0x21b   :  { %v749_v50 = vadd.f32 %v4212_v48, %v4568_v24  ;;  %v743_v51 = vpop.f32.mrb[19].mxu1  ;;  %925 = vadd.xlane.f32.xlu0 %v924_v49  ;;  %v867_v57 = vmul.f32 %v4575_v54, %v829_v43 }
 0x21c   :  { %v744_v52 = vadd.f32 %v4568_v24, %v743_v51  ;;  %v866_v53 = vmul.f32 %v4575_v54, %v828_v47 }
 0x21d   :  { %v831_v55 = vmax.f32 %v749_v50, 0.0  ;;  %v933_v2 = vsel %vm490_vm2, %v867_v57, 0.0 }
 0x21e   :  { %v830_v58 = vmax.f32 %v744_v52, 0.0  ;;  %928 = vadd.xlane.f32.xlu1 %v927_v56  ;;  %v4215_v59 = vpop.f32.mrb[20].mxu1  ;;  %v930_v60 = vsel %vm490_vm2, %v866_v53, 0.0 }
 0x21f   :  { %v759_v61 = vadd.f32 %v4215_v59, %v4568_v24  ;;  %v753_v62 = vpop.f32.mrb[21].mxu1  ;;  %931 = vadd.xlane.f32.xlu0 %v930_v60  ;;  %v869_v3 = vmul.f32 %v4575_v54, %v831_v55 }
 0x220   :  { %v754_v63 = vadd.f32 %v4568_v24, %v753_v62  ;;  %v868_v0 = vmul.f32 %v4575_v54, %v830_v58  ;;  %v1043_v62 = vlaneseq }
 0x221   :  { %v833_v1 = vmax.f32 %v759_v61, 0.0  ;;  %v939_v12 = vsel %vm490_vm2, %v869_v3, 0.0 }
 0x222   :  { %v832_v4 = vmax.f32 %v754_v63, 0.0  ;;  %934 = vadd.xlane.f32.xlu1 %v933_v2  ;;  %v4218_v5 = vpop.f32.mrb[22].mxu1  ;;  %v936_v6 = vsel %vm490_vm2, %v868_v0, 0.0  ;;  %v4369_v63 = vmov 1966171168   ;;  %v4677_v2 = vstv %s5584_s6  ;;  %s4370_s6 = smov [#allocation9]  }
 0x223   :  { %v769_v7 = vadd.f32 %v4218_v5, %v4568_v24  ;;  %v763_v8 = vpop.f32.mrb[23].mxu1  ;;  %937 = vadd.xlane.f32.xlu0 %v936_v6  ;;  %v871_v13 = vmul.f32 %v4575_v54, %v833_v1  ;;  %v2072_v0 = vunpack.c.l.s4 %v4369_v63  ;;  %v4672_v1 = vshrl.u32 %v1043_v62, 7  ;;  %s3948_s19 = sshll.u32 %s4370_s6, 4  ;;  %s3949_s19 = int_to_ptr.vmem [resolvable:$true] %s3948_s19 }
 0x224   :  { %v764_v9 = vadd.f32 %v4568_v24, %v763_v8  ;;  %v870_v10 = vmul.f32 %v4575_v54, %v832_v4  ;;  %s4335_s20 = scalar_lea.vmem %s3949_s19, 32  ;;  %p4340_p11 = scmp.lt.s32.totalorder %s3949_s19, %s3949_s19 }
 0x225   :  { %v835_v11 = vmax.f32 %v769_v7, 0.0  ;;  %v945_v22 = vsel %vm490_vm2, %v871_v13, 0.0  ;;  %v2073_v3 = vunpack.c.0.s8 %v2072_v0  ;;  %v4683_v4 = vsub.s32 1, %v4672_v1  ;;  %p4336_p10 = scmp.ne.s32.totalorder %s3949_s19, %s4335_s20  ;;  %p4341_p12 = scmp.lt.s32.totalorder %s4335_s20, %s4335_s20 }
 0x226   :  { %v834_v14 = vmax.f32 %v764_v9, 0.0  ;;  %940 = vadd.xlane.f32.xlu1 %v939_v12  ;;  %v4221_v15 = vpop.f32.mrb[24].mxu1  ;;  %v942_v16 = vsel %vm490_vm2, %v870_v10, 0.0  ;;  %v4686_v5 = vsub.s32 2, %v4672_v1  ;;  %v4689_v6 = vsub.s32 3, %v4672_v1 }
 0x227   :  { %v779_v17 = vadd.f32 %v4221_v15, %v4568_v24  ;;  %v773_v18 = vpop.f32.mrb[25].mxu1  ;;  %943 = vadd.xlane.f32.xlu0 %v942_v16  ;;  %v873_v23 = vmul.f32 %v4575_v54, %v835_v11  ;;  %v4692_v8 = vsub.s32 4, %v4672_v1  ;;  %v4695_v9 = vsub.s32 5, %v4672_v1  ;;  %p4342_p13 = por %p4341_p12, %p4340_p11 }
 0x228   :  { %v774_v19 = vadd.f32 %v4568_v24, %v773_v18  ;;  %v872_v20 = vmul.f32 %v4575_v54, %v834_v14  ;;  %v4698_v10 = vsub.s32 6, %v4672_v1  ;;  %v4701_v11 = vsub.s32 7, %v4672_v1 }
 0x229   :  { %v837_v21 = vmax.f32 %v779_v17, 0.0  ;;  %v951_v33 = vsel %vm490_vm2, %v873_v23, 0.0  ;;  %v4705_v13 = vsub.s32 %v2073_v3, %v4672_v1  ;;  %p4343_p0 = pnand %p4342_p13, %p4336_p10 }
 0x22a   :  { %v836_v25 = vmax.f32 %v774_v19, 0.0  ;;  %946 = vadd.xlane.f32.xlu1 %v945_v22  ;;  %v4224_v26 = vpop.f32.mrb[26].mxu1  ;;  %v948_v27 = vsel %vm490_vm2, %v872_v20, 0.0 }
 0x22b   :  { %v789_v28 = vadd.f32 %v4224_v26, %v4568_v24  ;;  %v783_v29 = vpop.f32.mrb[27].mxu1  ;;  %949 = vadd.xlane.f32.xlu0 %v948_v27  ;;  %v875_v34 = vmul.f32 %v4575_v54, %v837_v21 }
 0x22c   :  { %v784_v30 = vadd.f32 %v4568_v24, %v783_v29  ;;  %v874_v31 = vmul.f32 %v4575_v54, %v836_v25 }
 0x22d   :  { %v839_v32 = vmax.f32 %v789_v28, 0.0  ;;  %v957_v42 = vsel %vm490_vm2, %v875_v34, 0.0 }
 0x22e   :  { %v838_v35 = vmax.f32 %v784_v30, 0.0  ;;  %952 = vadd.xlane.f32.xlu1 %v951_v33  ;;  %v954_v36 = vsel %vm490_vm2, %v874_v31, 0.0  ;;  %v4227_v37 = vpop.f32.mrb[28].mxu1 }
 0x22f   :  { %955 = vadd.xlane.f32.xlu0 %v954_v36  ;;  %v799_v38 = vadd.f32 %v4227_v37, %v4568_v24  ;;  %v793_v39 = vpop.f32.mrb[29].mxu1  ;;  %v877_v44 = vmul.f32 %v4575_v54, %v839_v32 }
 0x230   :  { %v794_v40 = vadd.f32 %v4568_v24, %v793_v39  ;;  %v876_v41 = vmul.f32 %v4575_v54, %v838_v35 }
 0x231   :  { %v841_v43 = vmax.f32 %v799_v38, 0.0  ;;  %v963_v53 = vsel %vm490_vm2, %v877_v44, 0.0 }
 0x232   :  { %958 = vadd.xlane.f32.xlu1 %v957_v42  ;;  %v840_v45 = vmax.f32 %v794_v40, 0.0  ;;  %v960_v46 = vsel %vm490_vm2, %v876_v41, 0.0  ;;  %v4230_v47 = vpop.f32.mrb[30].mxu1 }
 0x233   :  { %961 = vadd.xlane.f32.xlu0 %v960_v46  ;;  %v809_v48 = vadd.f32 %v4230_v47, %v4568_v24  ;;  %v803_v49 = vpop.f32.mrb[31].mxu1  ;;  %v879_v50 = vmul.f32 %v4575_v54, %v841_v43 }
 0x234   :  { %v804_v51 = vadd.f32 %v4568_v24, %v803_v49  ;;  %v878_v52 = vmul.f32 %v4575_v54, %v840_v45 }
 0x235   :  { %v843_v55 = vmax.f32 %v809_v48, 0.0  ;;  %v969_v58 = vsel %vm490_vm2, %v879_v50, 0.0 }
 0x236   :  { %964 = vadd.xlane.f32.xlu1 %v963_v53  ;;  %v842_v56 = vmax.f32 %v804_v51, 0.0  ;;  %v966_v57 = vsel %vm490_vm2, %v878_v52, 0.0 }
 0x237   :  { %967 = vadd.xlane.f32.xlu0 %v966_v57  ;;  %v881_v59 = vmul.f32 %v4575_v54, %v843_v55 }
 0x238   :  { %v880_v60 = vmul.f32 %v4575_v54, %v842_v56  ;;  %v4680_v54 = vsub.s32 0, %v4672_v1 }
 0x239   :  { %v975_v24 = vsel %vm490_vm2, %v881_v59, 0.0 }
 0x23a   :  { %970 = vadd.xlane.f32.xlu1 %v969_v58  ;;  %v972_v61 = vsel %vm490_vm2, %v880_v60, 0.0  ;;  %vm3939_vm2 = vcmp.lt.s32.totalorder %v1043_v62, 256 }
 0x23b   :  { %973 = vadd.xlane.f32.xlu0 %v972_v61 }
 0x23e   :  { %976 = vadd.xlane.f32.xlu1 %v975_v24 }
 0x28b   :  { %v887_v7 = vpop.xlane.xlu0 %886 }
 0x28c   :  { %v980_v12 = vadd.f32 %v4677_v2, %v887_v7 }
 0x28e   :  { %v1078_v14 = vrot.slane %v980_v12, %v4680_v54  ;;  %v1082_v15 = vrot.slane %v980_v12, %v4683_v4  ;;  %v1086_v16 = vrot.slane %v980_v12, %v4686_v5  ;;  %v1090_v17 = vrot.slane %v980_v12, %v4689_v6 }
 0x28f   :  { %v893_v18 = vpop.xlane.xlu1 %892  ;;  %v884_v19 = vpop.xlane.xlu0 %883  ;;  %v1094_v20 = vrot.slane %v980_v12, %v4692_v8  ;;  %v1098_v21 = vrot.slane %v980_v12, %v4695_v9  ;;  %v1102_v22 = vrot.slane %v980_v12, %v4698_v10  ;;  %v1106_v23 = vrot.slane %v980_v12, %v4701_v11 }
 0x290   :  { %v982_v25 = vadd.f32 %v4677_v2, %v893_v18  ;;  %v2116_v26 = vcombine.low %v1078_v14, %v1082_v15  ;;  %v2117_v27 = vcombine.low %v1086_v16, %v1090_v17  ;;  %v979_v28 = vadd.f32 %v4677_v2, %v884_v19 }
 0x291   :  { %v2118_v29 = vcombine.low %v1094_v20, %v1098_v21  ;;  %v2119_v30 = vcombine.low %v1102_v22, %v1106_v23 }
 0x292   :  { %v2126_v31 = vrot.slane %v2116_v26, %v4705_v13  ;;  %v2133_v32 = vrot.slane %v2117_v27, %v4705_v13  ;;  %v1142_v33 = vrot.slane %v982_v25, %v4680_v54  ;;  %v1146_v34 = vrot.slane %v982_v25, %v4683_v4 }
 0x293   :  { %v890_v35 = vpop.xlane.xlu1 %889  ;;  %v2140_v36 = vrot.slane %v2118_v29, %v4705_v13  ;;  %v2147_v37 = vrot.slane %v2119_v30, %v4705_v13  ;;  %v1150_v38 = vrot.slane %v982_v25, %v4686_v5  ;;  %v1154_v39 = vrot.slane %v982_v25, %v4689_v6 }
 0x294   :  { %v4726_v40 = vadd.f32 %v4677_v2, %v890_v35  ;;  %v896_v41 = vpop.xlane.xlu0 %895  ;;  %v2148_v42 = vcombine.low %v2126_v31, %v2133_v32  ;;  %v1158_v43 = vrot.slane %v982_v25, %v4692_v8  ;;  %v1162_v44 = vrot.slane %v982_v25, %v4695_v9 }
 0x295   :  { %v4731_v45 = vadd.f32 %v4677_v2, %v896_v41  ;;  %v2149_v46 = vcombine.low %v2140_v36, %v2147_v37  ;;  %v1166_v47 = vrot.slane %v982_v25, %v4698_v10  ;;  %v1170_v48 = vrot.slane %v982_v25, %v4701_v11 }
 0x296   :  { %v2156_v49 = vrot.slane %v2148_v42, %v4705_v13  ;;  %v2214_v50 = vcombine.low %v1142_v33, %v1146_v34  ;;  %v2215_v51 = vcombine.low %v1150_v38, %v1154_v39  ;;  %v2216_v52 = vcombine.low %v1158_v43, %v1162_v44 }
 0x297   :  { %v899_v53 = vpop.xlane.xlu1 %898  ;;  %v2163_v55 = vrot.slane %v2149_v46, %v4705_v13  ;;  %v2217_v56 = vcombine.low %v1166_v47, %v1170_v48  ;;  %v1046_v57 = vrot.slane %v979_v28, %v4680_v54  ;;  %v1050_v58 = vrot.slane %v979_v28, %v4683_v4 }
 0x298   :  { %v4740_v59 = vadd.f32 %v4677_v2, %v899_v53  ;;  %v902_v60 = vpop.xlane.xlu0 %901  ;;  %v2224_v61 = vrot.slane %v2214_v50, %v4705_v13  ;;  %v2231_v24 = vrot.slane %v2215_v51, %v4705_v13  ;;  %v2238_v63 = vrot.slane %v2216_v52, %v4705_v13 }
 0x299   :  { %v4746_v0 = vadd.f32 %v4677_v2, %v902_v60  ;;  %v2164_v3 = vcombine.low %v2156_v49, %v2163_v55  ;;  %v2245_v7 = vrot.slane %v2217_v56, %v4705_v13  ;;  %v1054_v12 = vrot.slane %v979_v28, %v4686_v5 }
 0x29a   :  { %v2246_v14 = vcombine.low %v2224_v61, %v2231_v24  ;;  %v1058_v15 = vrot.slane %v979_v28, %v4689_v6  ;;  %v1062_v16 = vrot.slane %v979_v28, %v4692_v8  ;;  %v1066_v17 = vrot.slane %v979_v28, %v4695_v9 }
 0x29b   :  { %3639 = vperm.xlu1 %4267, %v2164_v3   ;;  %v905_v18 = vpop.xlane.xlu1 %904  ;;  %v2247_v19 = vcombine.low %v2238_v63, %v2245_v7  ;;  %v1070_v20 = vrot.slane %v979_v28, %v4698_v10  ;;  %v1074_v21 = vrot.slane %v979_v28, %v4701_v11  ;;  %v2067_v22 = vcombine.low %v1046_v57, %v1050_v58 }
 0x29c   :  { %v4756_v23 = vadd.f32 %v4677_v2, %v905_v18  ;;  %v908_v25 = vpop.xlane.xlu0 %907  ;;  %v2254_v26 = vrot.slane %v2246_v14, %v4705_v13  ;;  %v2068_v27 = vcombine.low %v1054_v12, %v1058_v15  ;;  %v2069_v29 = vcombine.low %v1062_v16, %v1066_v17 }
 0x29d   :  { %v4760_v30 = vadd.f32 %v4677_v2, %v908_v25  ;;  %v2261_v31 = vrot.slane %v2247_v19, %v4705_v13  ;;  %v2070_v32 = vcombine.low %v1070_v20, %v1074_v21  ;;  %v2077_v33 = vrot.slane %v2067_v22, %v4705_v13 }
 0x29e   :  { %v2084_v34 = vrot.slane %v2068_v27, %v4705_v13  ;;  %v2091_v28 = vrot.slane %v2069_v29, %v4705_v13  ;;  %v1110_v35 = vrot.slane %v4726_v40, %v4680_v54  ;;  %v1114_v36 = vrot.slane %v4726_v40, %v4683_v4 }
 0x29f   :  { %v2262_v37 = vcombine.low %v2254_v26, %v2261_v31  ;;  %v2098_v38 = vrot.slane %v2070_v32, %v4705_v13  ;;  %v911_v39 = vpop.xlane.xlu1 %910  ;;  %v1118_v41 = vrot.slane %v4726_v40, %v4686_v5  ;;  %v1122_v42 = vrot.slane %v4726_v40, %v4689_v6 }
 0x2a0   :  { %v2099_v43 = vcombine.low %v2077_v33, %v2084_v34  ;;  %v4776_v44 = vadd.f32 %v4677_v2, %v911_v39  ;;  %v914_v46 = vpop.xlane.xlu0 %913  ;;  %v1126_v47 = vrot.slane %v4726_v40, %v4692_v8  ;;  %v1130_v48 = vrot.slane %v4726_v40, %v4695_v9 }
 0x2a1   :  { %3645 = vperm.xlu1 %4267, %v2262_v37   ;;  %v2100_v49 = vcombine.low %v2091_v28, %v2098_v38  ;;  %v4783_v50 = vadd.f32 %v4677_v2, %v914_v46  ;;  %v1134_v51 = vrot.slane %v4726_v40, %v4698_v10  ;;  %v1138_v52 = vrot.slane %v4726_v40, %v4701_v11 }
 0x2a2   :  { %v2107_v53 = vrot.slane %v2099_v43, %v4705_v13  ;;  %v2165_v55 = vcombine.low %v1110_v35, %v1114_v36  ;;  %v2166_v56 = vcombine.low %v1118_v41, %v1122_v42  ;;  %v2167_v57 = vcombine.low %v1126_v47, %v1130_v48 }
 0x2a3   :  { %v2114_v58 = vrot.slane %v2100_v49, %v4705_v13  ;;  %v2168_v60 = vcombine.low %v1134_v51, %v1138_v52  ;;  %v917_v61 = vpop.xlane.xlu1 %916  ;;  %v1206_v24 = vrot.slane %v4740_v59, %v4680_v54  ;;  %v1210_v63 = vrot.slane %v4740_v59, %v4683_v4 }
 0x2a4   :  { %v2175_v3 = vrot.slane %v2165_v55, %v4705_v13  ;;  %v2182_v7 = vrot.slane %v2166_v56, %v4705_v13  ;;  %v2189_v40 = vrot.slane %v2167_v57, %v4705_v13  ;;  %v4799_v12 = vadd.f32 %v4677_v2, %v917_v61  ;;  %v920_v14 = vpop.xlane.xlu0 %919 }
 0x2a5   :  { %v2115_v15 = vcombine.low %v2107_v53, %v2114_v58  ;;  %v2196_v16 = vrot.slane %v2168_v60, %v4705_v13  ;;  %v4803_v17 = vadd.f32 %v4677_v2, %v920_v14  ;;  %v1214_v18 = vrot.slane %v4740_v59, %v4686_v5 }
 0x2a6   :  { %v2197_v19 = vcombine.low %v2175_v3, %v2182_v7  ;;  %v1218_v20 = vrot.slane %v4740_v59, %v4689_v6  ;;  %v1222_v21 = vrot.slane %v4740_v59, %v4692_v8  ;;  %v1226_v22 = vrot.slane %v4740_v59, %v4695_v9 }
 0x2a7   :  { %3636 = vperm.xlu0 %4268, %v2115_v15   ;;  %v2198_v25 = vcombine.low %v2189_v40, %v2196_v16  ;;  %v1230_v26 = vrot.slane %v4740_v59, %v4698_v10  ;;  %v1234_v27 = vrot.slane %v4740_v59, %v4701_v11  ;;  %v2312_v29 = vcombine.low %v1206_v24, %v1210_v63  ;;  %v923_v31 = vpop.xlane.xlu1 %922 }
 0x2a8   :  { %v2205_v32 = vrot.slane %v2197_v19, %v4705_v13  ;;  %v2313_v33 = vcombine.low %v1214_v18, %v1218_v20  ;;  %v2314_v34 = vcombine.low %v1222_v21, %v1226_v22  ;;  %v4819_v28 = vadd.f32 %v4677_v2, %v923_v31  ;;  %v926_v35 = vpop.xlane.xlu0 %925 }
 0x2a9   :  { %v2212_v36 = vrot.slane %v2198_v25, %v4705_v13  ;;  %v2315_v37 = vcombine.low %v1230_v26, %v1234_v27  ;;  %v2322_v38 = vrot.slane %v2312_v29, %v4705_v13  ;;  %v4824_v39 = vadd.f32 %v4677_v2, %v926_v35 }
 0x2aa   :  { %v2329_v59 = vrot.slane %v2313_v33, %v4705_v13  ;;  %v2336_v41 = vrot.slane %v2314_v34, %v4705_v13  ;;  %v1174_v42 = vrot.slane %v4731_v45, %v4680_v54  ;;  %v1178_v43 = vrot.slane %v4731_v45, %v4683_v4 }
 0x2ab   :  { %v2213_v46 = vcombine.low %v2205_v32, %v2212_v36  ;;  %v2343_v47 = vrot.slane %v2315_v37, %v4705_v13  ;;  %v1182_v48 = vrot.slane %v4731_v45, %v4686_v5  ;;  %v1186_v49 = vrot.slane %v4731_v45, %v4689_v6  ;;  %v929_v51 = vpop.xlane.xlu1 %928 }
 0x2ac   :  { %v2344_v52 = vcombine.low %v2322_v38, %v2329_v59  ;;  %v1190_v53 = vrot.slane %v4731_v45, %v4692_v8  ;;  %v1194_v55 = vrot.slane %v4731_v45, %v4695_v9  ;;  %v1198_v56 = vrot.slane %v4731_v45, %v4698_v10  ;;  %v932_v57 = vpop.xlane.xlu0 %931 }
 0x2ad   :  { %3642 = vperm.xlu1 %4267, %v2213_v46   ;;  %v2345_v58 = vcombine.low %v2336_v41, %v2343_v47  ;;  %v1202_v60 = vrot.slane %v4731_v45, %v4701_v11  ;;  %v2263_v61 = vcombine.low %v1174_v42, %v1178_v43  ;;  %v2264_v24 = vcombine.low %v1182_v48, %v1186_v49 }
 0x2ae   :  { %v2352_v63 = vrot.slane %v2344_v52, %v4705_v13  ;;  %v2265_v3 = vcombine.low %v1190_v53, %v1194_v55  ;;  %v4847_v7 = vadd.f32 %v4677_v2, %v929_v51  ;;  %v4850_v40 = vadd.f32 %v4677_v2, %v932_v57 }
 0x2af   :  { %v2359_v14 = vrot.slane %v2345_v58, %v4705_v13  ;;  %v2266_v15 = vcombine.low %v1198_v56, %v1202_v60  ;;  %v2273_v16 = vrot.slane %v2263_v61, %v4705_v13  ;;  %v2280_v18 = vrot.slane %v2264_v24, %v4705_v13  ;;  %v935_v48 = vpop.xlane.xlu1 %934 }
 0x2b0   :  { %v2287_v45 = vrot.slane %v2265_v3, %v4705_v13  ;;  %v1334_v19 = vrot.slane %v4776_v44, %v4680_v54  ;;  %v1338_v20 = vrot.slane %v4776_v44, %v4683_v4  ;;  %v1342_v21 = vrot.slane %v4776_v44, %v4686_v5  ;;  %v938_v55 = vpop.xlane.xlu0 %937 }
 0x2b1   :  { %v2360_v22 = vcombine.low %v2352_v63, %v2359_v14  ;;  %v2294_v25 = vrot.slane %v2266_v15, %v4705_v13  ;;  %v2295_v26 = vcombine.low %v2273_v16, %v2280_v18  ;;  %v1346_v27 = vrot.slane %v4776_v44, %v4689_v6 }
 0x2b2   :  { %v1350_v29 = vrot.slane %v4776_v44, %v4692_v8  ;;  %v1354_v31 = vrot.slane %v4776_v44, %v4695_v9  ;;  %v1358_v32 = vrot.slane %v4776_v44, %v4698_v10  ;;  %v1362_v33 = vrot.slane %v4776_v44, %v4701_v11 }
 0x2b3   :  { %3651 = vperm.xlu1 %4267, %v2360_v22   ;;  %v2296_v34 = vcombine.low %v2287_v45, %v2294_v25  ;;  %v2303_v35 = vrot.slane %v2295_v26, %v4705_v13  ;;  %v2508_v36 = vcombine.low %v1334_v19, %v1338_v20  ;;  %v2509_v37 = vcombine.low %v1342_v21, %v1346_v27  ;;  %v941_v27 = vpop.xlane.xlu1 %940 }
 0x2b4   :  { %v2510_v38 = vcombine.low %v1350_v29, %v1354_v31  ;;  %v2511_v59 = vcombine.low %v1358_v32, %v1362_v33  ;;  %v1270_v41 = vrot.slane %v4756_v23, %v4680_v54  ;;  %v1274_v42 = vrot.slane %v4756_v23, %v4683_v4 }
 0x2b5   :  { %v2310_v43 = vrot.slane %v2296_v34, %v4705_v13  ;;  %v2518_v46 = vrot.slane %v2508_v36, %v4705_v13  ;;  %v2525_v44 = vrot.slane %v2509_v37, %v4705_v13  ;;  %v1278_v47 = vrot.slane %v4756_v23, %v4686_v5  ;;  %v944_v34 = vpop.xlane.xlu0 %943 }
 0x2b6   :  { %v2532_v49 = vrot.slane %v2510_v38, %v4705_v13  ;;  %v2539_v51 = vrot.slane %v2511_v59, %v4705_v13  ;;  %v1282_v52 = vrot.slane %v4756_v23, %v4689_v6  ;;  %v1286_v53 = vrot.slane %v4756_v23, %v4692_v8 }
 0x2b7   :  { %v2311_v56 = vcombine.low %v2303_v35, %v2310_v43  ;;  %v2540_v57 = vcombine.low %v2518_v46, %v2525_v44  ;;  %v1290_v58 = vrot.slane %v4756_v23, %v4695_v9  ;;  %v1294_v60 = vrot.slane %v4756_v23, %v4698_v10 }
 0x2b8   :  { %v2541_v61 = vcombine.low %v2532_v49, %v2539_v51  ;;  %v1298_v24 = vrot.slane %v4756_v23, %v4701_v11  ;;  %v2410_v63 = vcombine.low %v1270_v41, %v1274_v42  ;;  %v2411_v3 = vcombine.low %v1278_v47, %v1282_v52 }
 0x2b9   :  { %3648 = vperm.xlu1 %4267, %v2311_v56   ;;  %v2548_v14 = vrot.slane %v2540_v57, %v4705_v13  ;;  %v2412_v15 = vcombine.low %v1286_v53, %v1290_v58  ;;  %v4897_v16 = vadd.f32 %v4677_v2, %v935_v48  ;;  %v4900_v18 = vadd.f32 %v4677_v2, %v938_v55  ;;  %v947_v58 = vpop.xlane.xlu1 %946 }
 0x2ba   :  { %v2555_v45 = vrot.slane %v2541_v61, %v4705_v13  ;;  %v2413_v19 = vcombine.low %v1294_v60, %v1298_v24  ;;  %v2420_v20 = vrot.slane %v2410_v63, %v4705_v13  ;;  %v2427_v21 = vrot.slane %v2411_v3, %v4705_v13  ;;  %v950_v3 = vpop.xlane.xlu0 %949 }
 0x2bb   :  { %v2434_v23 = vrot.slane %v2412_v15, %v4705_v13  ;;  %v1238_v22 = vrot.slane %v4746_v0, %v4680_v54  ;;  %v1242_v25 = vrot.slane %v4746_v0, %v4683_v4  ;;  %v1246_v26 = vrot.slane %v4746_v0, %v4686_v5 }
 0x2bc   :  { %v2556_v29 = vcombine.low %v2548_v14, %v2555_v45  ;;  %v2441_v31 = vrot.slane %v2413_v19, %v4705_v13  ;;  %v2442_v32 = vcombine.low %v2420_v20, %v2427_v21  ;;  %v1250_v33 = vrot.slane %v4746_v0, %v4689_v6 }
 0x2bd   :  { %v1254_v35 = vrot.slane %v4746_v0, %v4692_v8  ;;  %v1258_v36 = vrot.slane %v4746_v0, %v4695_v9  ;;  %v1262_v37 = vrot.slane %v4746_v0, %v4698_v10  ;;  %v1266_v38 = vrot.slane %v4746_v0, %v4701_v11 }
 0x2be   :  { %3663 = vperm.xlu0 %4268, %v2556_v29   ;;  %v2443_v59 = vcombine.low %v2434_v23, %v2441_v31  ;;  %v2450_v41 = vrot.slane %v2442_v32, %v4705_v13  ;;  %v2361_v42 = vcombine.low %v1238_v22, %v1242_v25  ;;  %v2362_v43 = vcombine.low %v1246_v26, %v1250_v33 }
 0x2bf   :  { %v2363_v46 = vcombine.low %v1254_v35, %v1258_v36  ;;  %v2364_v44 = vcombine.low %v1262_v37, %v1266_v38  ;;  %v4925_v47 = vadd.f32 %v4677_v2, %v941_v27  ;;  %v4928_v48 = vadd.f32 %v4677_v2, %v944_v34  ;;  %v953_v38 = vpop.xlane.xlu1 %952 }
 0x2c0   :  { %v2457_v49 = vrot.slane %v2443_v59, %v4705_v13  ;;  %v2371_v51 = vrot.slane %v2361_v42, %v4705_v13  ;;  %v2378_v0 = vrot.slane %v2362_v43, %v4705_v13  ;;  %v1302_v52 = vrot.slane %v4760_v30, %v4680_v54 }
 0x2c1   :  { %v2385_v53 = vrot.slane %v2363_v46, %v4705_v13  ;;  %v2392_v55 = vrot.slane %v2364_v44, %v4705_v13  ;;  %v1306_v56 = vrot.slane %v4760_v30, %v4683_v4  ;;  %v1310_v57 = vrot.slane %v4760_v30, %v4686_v5  ;;  %v956_v46 = vpop.xlane.xlu0 %955 }
 0x2c2   :  { %v2458_v60 = vcombine.low %v2450_v41, %v2457_v49  ;;  %v2393_v61 = vcombine.low %v2371_v51, %v2378_v0  ;;  %v1314_v24 = vrot.slane %v4760_v30, %v4689_v6  ;;  %v1318_v63 = vrot.slane %v4760_v30, %v4692_v8 }
 0x2c3   :  { %v2394_v14 = vcombine.low %v2385_v53, %v2392_v55  ;;  %v1322_v15 = vrot.slane %v4760_v30, %v4695_v9  ;;  %v1326_v45 = vrot.slane %v4760_v30, %v4698_v10  ;;  %v1330_v19 = vrot.slane %v4760_v30, %v4701_v11 }
 0x2c4   :  { %3657 = vperm.xlu1 %4267, %v2458_v60   ;;  %v2401_v20 = vrot.slane %v2393_v61, %v4705_v13  ;;  %v2459_v21 = vcombine.low %v1302_v52, %v1306_v56  ;;  %v2460_v23 = vcombine.low %v1310_v57, %v1314_v24  ;;  %v4953_v22 = vadd.f32 %v4677_v2, %v947_v58 }
 0x2c5   :  { %v2408_v25 = vrot.slane %v2394_v14, %v4705_v13  ;;  %v2461_v26 = vcombine.low %v1318_v63, %v1322_v15  ;;  %v2462_v27 = vcombine.low %v1326_v45, %v1330_v19  ;;  %v4957_v29 = vadd.f32 %v4677_v2, %v950_v3 }
 0x2c6   :  { %v2469_v31 = vrot.slane %v2459_v21, %v4705_v13  ;;  %v2476_v32 = vrot.slane %v2460_v23, %v4705_v13  ;;  %v1398_v30 = vrot.slane %v4799_v12, %v4680_v54  ;;  %v1402_v33 = vrot.slane %v4799_v12, %v4683_v4 }
 0x2c7   :  { %v2409_v34 = vcombine.low %v2401_v20, %v2408_v25  ;;  %v2483_v35 = vrot.slane %v2461_v26, %v4705_v13  ;;  %v2490_v36 = vrot.slane %v2462_v27, %v4705_v13  ;;  %v1406_v37 = vrot.slane %v4799_v12, %v4686_v5 }
 0x2c8   :  { %v2491_v59 = vcombine.low %v2469_v31, %v2476_v32  ;;  %v1410_v41 = vrot.slane %v4799_v12, %v4689_v6  ;;  %v1414_v42 = vrot.slane %v4799_v12, %v4692_v8  ;;  %v1418_v43 = vrot.slane %v4799_v12, %v4695_v9 }
 0x2c9   :  { %3654 = vperm.xlu1 %4267, %v2409_v34   ;;  %v2492_v44 = vcombine.low %v2483_v35, %v2490_v36  ;;  %v1422_v49 = vrot.slane %v4799_v12, %v4698_v10  ;;  %v1426_v51 = vrot.slane %v4799_v12, %v4701_v11  ;;  %v2606_v0 = vcombine.low %v1398_v30, %v1402_v33 }
 0x2ca   :  { %v2499_v52 = vrot.slane %v2491_v59, %v4705_v13  ;;  %v2607_v53 = vcombine.low %v1406_v37, %v1410_v41  ;;  %v2608_v55 = vcombine.low %v1414_v42, %v1418_v43  ;;  %v4981_v56 = vadd.f32 %v4677_v2, %v953_v38 }
 0x2cb   :  { %v2506_v57 = vrot.slane %v2492_v44, %v4705_v13  ;;  %v2609_v58 = vcombine.low %v1422_v49, %v1426_v51  ;;  %v2616_v60 = vrot.slane %v2606_v0, %v4705_v13  ;;  %v4986_v61 = vadd.f32 %v4677_v2, %v956_v46  ;;  %v959_v46 = vpop.xlane.xlu1 %958 }
 0x2cc   :  { %v2623_v24 = vrot.slane %v2607_v53, %v4705_v13  ;;  %v2630_v12 = vrot.slane %v2608_v55, %v4705_v13  ;;  %v1590_v63 = vrot.slane %v4897_v16, %v4680_v54  ;;  %v1594_v3 = vrot.slane %v4897_v16, %v4683_v4 }
 0x2cd   :  { %v2507_v14 = vcombine.low %v2499_v52, %v2506_v57  ;;  %v2637_v15 = vrot.slane %v2609_v58, %v4705_v13  ;;  %v1598_v45 = vrot.slane %v4897_v16, %v4686_v5  ;;  %v1602_v19 = vrot.slane %v4897_v16, %v4689_v6  ;;  %v962_v52 = vpop.xlane.xlu0 %961 }
 0x2ce   :  { %v2638_v20 = vcombine.low %v2616_v60, %v2623_v24  ;;  %v1606_v21 = vrot.slane %v4897_v16, %v4692_v8  ;;  %v1610_v23 = vrot.slane %v4897_v16, %v4695_v9  ;;  %v1614_v25 = vrot.slane %v4897_v16, %v4698_v10 }
 0x2cf   :  { %3660 = vperm.xlu1 %4267, %v2507_v14   ;;  %v2639_v26 = vcombine.low %v2630_v12, %v2637_v15  ;;  %v1618_v27 = vrot.slane %v4897_v16, %v4701_v11  ;;  %v2900_v31 = vcombine.low %v1590_v63, %v1594_v3  ;;  %v2901_v32 = vcombine.low %v1598_v45, %v1602_v19 }
 0x2d0   :  { %v2646_v30 = vrot.slane %v2638_v20, %v4705_v13  ;;  %v2902_v33 = vcombine.low %v1606_v21, %v1610_v23  ;;  %v1366_v34 = vrot.slane %v4783_v50, %v4680_v54  ;;  %v1370_v35 = vrot.slane %v4783_v50, %v4683_v4 }
 0x2d1   :  { %v2653_v36 = vrot.slane %v2639_v26, %v4705_v13  ;;  %v2903_v37 = vcombine.low %v1614_v25, %v1618_v27  ;;  %v2910_v38 = vrot.slane %v2900_v31, %v4705_v13  ;;  %v2917_v59 = vrot.slane %v2901_v32, %v4705_v13 }
 0x2d2   :  { %v2924_v16 = vrot.slane %v2902_v33, %v4705_v13  ;;  %v1374_v41 = vrot.slane %v4783_v50, %v4686_v5  ;;  %v1378_v42 = vrot.slane %v4783_v50, %v4689_v6  ;;  %v1382_v43 = vrot.slane %v4783_v50, %v4692_v8 }
 0x2d3   :  { %v2654_v44 = vcombine.low %v2646_v30, %v2653_v36  ;;  %v2931_v49 = vrot.slane %v2903_v37, %v4705_v13  ;;  %v2932_v51 = vcombine.low %v2910_v38, %v2917_v59  ;;  %v1386_v0 = vrot.slane %v4783_v50, %v4695_v9 }
 0x2d4   :  { %v1390_v53 = vrot.slane %v4783_v50, %v4698_v10  ;;  %v1394_v55 = vrot.slane %v4783_v50, %v4701_v11  ;;  %v2557_v57 = vcombine.low %v1366_v34, %v1370_v35  ;;  %v2558_v58 = vcombine.low %v1374_v41, %v1378_v42 }
 0x2d5   :  { %3669 = vperm.xlu1 %4267, %v2654_v44   ;;  %v2933_v60 = vcombine.low %v2924_v16, %v2931_v49  ;;  %v2940_v24 = vrot.slane %v2932_v51, %v4705_v13  ;;  %v2559_v12 = vcombine.low %v1382_v43, %v1386_v0  ;;  %v5031_v63 = vadd.f32 %v4677_v2, %v959_v46 }
 0x2d6   :  { %v2560_v3 = vcombine.low %v1390_v53, %v1394_v55  ;;  %v2567_v14 = vrot.slane %v2557_v57, %v4705_v13  ;;  %v2574_v15 = vrot.slane %v2558_v58, %v4705_v13  ;;  %v5036_v45 = vadd.f32 %v4677_v2, %v962_v52  ;;  %v965_v52 = vpop.xlane.xlu1 %964 }
 0x2d7   :  { %v2947_v50 = vrot.slane %v2933_v60, %v4705_v13  ;;  %v2581_v19 = vrot.slane %v2559_v12, %v4705_v13  ;;  %v1654_v20 = vrot.slane %v4925_v47, %v4680_v54  ;;  %v1658_v21 = vrot.slane %v4925_v47, %v4683_v4 }
 0x2d8   :  { %v2588_v23 = vrot.slane %v2560_v3, %v4705_v13  ;;  %v2589_v25 = vcombine.low %v2567_v14, %v2574_v15  ;;  %v1662_v26 = vrot.slane %v4925_v47, %v4686_v5  ;;  %v1666_v27 = vrot.slane %v4925_v47, %v4689_v6 }
 0x2d9   :  { %v2948_v31 = vcombine.low %v2940_v24, %v2947_v50  ;;  %v1670_v32 = vrot.slane %v4925_v47, %v4692_v8  ;;  %v1674_v30 = vrot.slane %v4925_v47, %v4695_v9  ;;  %v1678_v33 = vrot.slane %v4925_v47, %v4698_v10 }
 0x2da   :  { %v2590_v34 = vcombine.low %v2581_v19, %v2588_v23  ;;  %v2597_v35 = vrot.slane %v2589_v25, %v4705_v13  ;;  %v1682_v36 = vrot.slane %v4925_v47, %v4701_v11  ;;  %v2998_v37 = vcombine.low %v1654_v20, %v1658_v21 }
 0x2db   :  { %3687 = vperm.xlu0 %4268, %v2948_v31   ;;  %v2999_v38 = vcombine.low %v1662_v26, %v1666_v27  ;;  %v3000_v59 = vcombine.low %v1670_v32, %v1674_v30  ;;  %v1462_v16 = vrot.slane %v4819_v28, %v4680_v54  ;;  %v1466_v41 = vrot.slane %v4819_v28, %v4683_v4 }
 0x2dc   :  { %v2604_v42 = vrot.slane %v2590_v34, %v4705_v13  ;;  %v3001_v43 = vcombine.low %v1678_v33, %v1682_v36  ;;  %v3008_v46 = vrot.slane %v2998_v37, %v4705_v13  ;;  %v1470_v44 = vrot.slane %v4819_v28, %v4686_v5 }
 0x2dd   :  { %v3015_v47 = vrot.slane %v2999_v38, %v4705_v13  ;;  %v3022_v49 = vrot.slane %v3000_v59, %v4705_v13  ;;  %v1474_v51 = vrot.slane %v4819_v28, %v4689_v6  ;;  %v1478_v0 = vrot.slane %v4819_v28, %v4692_v8 }
 0x2de   :  { %v2605_v53 = vcombine.low %v2597_v35, %v2604_v42  ;;  %v3029_v55 = vrot.slane %v3001_v43, %v4705_v13  ;;  %v1482_v57 = vrot.slane %v4819_v28, %v4695_v9  ;;  %v1486_v58 = vrot.slane %v4819_v28, %v4698_v10 }
 0x2df   :  { %v3030_v60 = vcombine.low %v3008_v46, %v3015_v47  ;;  %v1490_v24 = vrot.slane %v4819_v28, %v4701_v11  ;;  %v2704_v12 = vcombine.low %v1462_v16, %v1466_v41  ;;  %v2705_v3 = vcombine.low %v1470_v44, %v1474_v51 }
 0x2e0   :  { %3666 = vperm.xlu1 %4267, %v2605_v53   ;;  %v3031_v14 = vcombine.low %v3022_v49, %v3029_v55  ;;  %v2706_v15 = vcombine.low %v1478_v0, %v1482_v57  ;;  %v5080_v50 = vadd.f32 %v4677_v2, %v965_v52  ;;  %v1718_v19 = vrot.slane %v4953_v22, %v4680_v54 }
 0x2e1   :  { %v3038_v20 = vrot.slane %v3030_v60, %v4705_v13  ;;  %v2707_v21 = vcombine.low %v1486_v58, %v1490_v24  ;;  %v2714_v23 = vrot.slane %v2704_v12, %v4705_v13  ;;  %v2721_v25 = vrot.slane %v2705_v3, %v4705_v13  ;;  %v971_v58 = vpop.xlane.xlu1 %970  ;;  %v968_v60 = vpop.xlane.xlu0 %967 }
 0x2e2   :  { %v3045_v28 = vrot.slane %v3031_v14, %v4705_v13  ;;  %v2728_v26 = vrot.slane %v2706_v15, %v4705_v13  ;;  %v1722_v27 = vrot.slane %v4953_v22, %v4683_v4  ;;  %v1726_v31 = vrot.slane %v4953_v22, %v4686_v5 }
 0x2e3   :  { %v2735_v32 = vrot.slane %v2707_v21, %v4705_v13  ;;  %v2736_v30 = vcombine.low %v2714_v23, %v2721_v25  ;;  %v1730_v33 = vrot.slane %v4953_v22, %v4689_v6  ;;  %v1734_v34 = vrot.slane %v4953_v22, %v4692_v8 }
 0x2e4   :  { %v3046_v35 = vcombine.low %v3038_v20, %v3045_v28  ;;  %v1738_v36 = vrot.slane %v4953_v22, %v4695_v9  ;;  %v1742_v37 = vrot.slane %v4953_v22, %v4698_v10  ;;  %v1746_v38 = vrot.slane %v4953_v22, %v4701_v11 }
 0x2e5   :  { %v2737_v59 = vcombine.low %v2728_v26, %v2735_v32  ;;  %v2744_v16 = vrot.slane %v2736_v30, %v4705_v13  ;;  %v3096_v41 = vcombine.low %v1718_v19, %v1722_v27  ;;  %v3097_v42 = vcombine.low %v1726_v31, %v1730_v33 }
 0x2e6   :  { %3693 = vperm.xlu0 %4268, %v3046_v35   ;;  %v3098_v43 = vcombine.low %v1734_v34, %v1738_v36  ;;  %v3099_v46 = vcombine.low %v1742_v37, %v1746_v38  ;;  %v1430_v44 = vrot.slane %v4803_v17, %v4680_v54  ;;  %v1434_v47 = vrot.slane %v4803_v17, %v4683_v4 }
 0x2e7   :  { %v2751_v49 = vrot.slane %v2737_v59, %v4705_v13  ;;  %v3106_v51 = vrot.slane %v3096_v41, %v4705_v13  ;;  %v3113_v22 = vrot.slane %v3097_v42, %v4705_v13  ;;  %v1438_v0 = vrot.slane %v4803_v17, %v4686_v5 }
 0x2e8   :  { %v3120_v52 = vrot.slane %v3098_v43, %v4705_v13  ;;  %v3127_v53 = vrot.slane %v3099_v46, %v4705_v13  ;;  %v1442_v55 = vrot.slane %v4803_v17, %v4689_v6  ;;  %v1446_v57 = vrot.slane %v4803_v17, %v4692_v8 }
 0x2e9   :  { %v2752_v24 = vcombine.low %v2744_v16, %v2751_v49  ;;  %v3128_v12 = vcombine.low %v3106_v51, %v3113_v22  ;;  %v1450_v3 = vrot.slane %v4803_v17, %v4695_v9  ;;  %v1454_v14 = vrot.slane %v4803_v17, %v4698_v10 }
 0x2ea   :  { %v3129_v15 = vcombine.low %v3120_v52, %v3127_v53  ;;  %v1458_v19 = vrot.slane %v4803_v17, %v4701_v11  ;;  %v2655_v20 = vcombine.low %v1430_v44, %v1434_v47  ;;  %v2656_v21 = vcombine.low %v1438_v0, %v1442_v55 }
 0x2eb   :  { %3675 = vperm.xlu1 %4267, %v2752_v24   ;;  %v3136_v23 = vrot.slane %v3128_v12, %v4705_v13  ;;  %v2657_v25 = vcombine.low %v1446_v57, %v1450_v3  ;;  %v5128_v28 = vadd.f32 %v4677_v2, %v971_v58  ;;  %v5131_v26 = vadd.f32 %v4677_v2, %v968_v60 }
 0x2ec   :  { %v3143_v27 = vrot.slane %v3129_v15, %v4705_v13  ;;  %v2658_v31 = vcombine.low %v1454_v14, %v1458_v19  ;;  %v2665_v32 = vrot.slane %v2655_v20, %v4705_v13  ;;  %v2672_v30 = vrot.slane %v2656_v21, %v4705_v13 }
 0x2ed   :  { %v2679_v17 = vrot.slane %v2657_v25, %v4705_v13  ;;  %v1782_v33 = vrot.slane %v4981_v56, %v4680_v54  ;;  %v1786_v34 = vrot.slane %v4981_v56, %v4683_v4  ;;  %v1790_v35 = vrot.slane %v4981_v56, %v4686_v5 }
 0x2ee   :  { %v3144_v36 = vcombine.low %v3136_v23, %v3143_v27  ;;  %v2686_v37 = vrot.slane %v2658_v31, %v4705_v13  ;;  %v2687_v38 = vcombine.low %v2665_v32, %v2672_v30  ;;  %v1794_v59 = vrot.slane %v4981_v56, %v4689_v6 }
 0x2ef   :  { %v1798_v16 = vrot.slane %v4981_v56, %v4692_v8  ;;  %v1802_v41 = vrot.slane %v4981_v56, %v4695_v9  ;;  %v1806_v42 = vrot.slane %v4981_v56, %v4698_v10  ;;  %v1810_v43 = vrot.slane %v4981_v56, %v4701_v11 }
 0x2f0   :  { %3699 = vperm.xlu0 %4268, %v3144_v36   ;;  %v2688_v46 = vcombine.low %v2679_v17, %v2686_v37  ;;  %v2695_v44 = vrot.slane %v2687_v38, %v4705_v13  ;;  %v3194_v47 = vcombine.low %v1782_v33, %v1786_v34  ;;  %v3195_v49 = vcombine.low %v1790_v35, %v1794_v59 }
 0x2f1   :  { %v3196_v51 = vcombine.low %v1798_v16, %v1802_v41  ;;  %v3197_v22 = vcombine.low %v1806_v42, %v1810_v43  ;;  %v1558_v0 = vrot.slane %v4850_v40, %v4680_v54  ;;  %v1562_v52 = vrot.slane %v4850_v40, %v4683_v4 }
 0x2f2   :  { %v2702_v53 = vrot.slane %v2688_v46, %v4705_v13  ;;  %v3204_v55 = vrot.slane %v3194_v47, %v4705_v13  ;;  %v3211_v56 = vrot.slane %v3195_v49, %v4705_v13  ;;  %v1566_v57 = vrot.slane %v4850_v40, %v4686_v5 }
 0x2f3   :  { %v3218_v58 = vrot.slane %v3196_v51, %v4705_v13  ;;  %v3225_v60 = vrot.slane %v3197_v22, %v4705_v13  ;;  %v1570_v24 = vrot.slane %v4850_v40, %v4689_v6  ;;  %v1574_v12 = vrot.slane %v4850_v40, %v4692_v8 }
 0x2f4   :  { %v2703_v3 = vcombine.low %v2695_v44, %v2702_v53  ;;  %v3226_v14 = vcombine.low %v3204_v55, %v3211_v56  ;;  %v1578_v15 = vrot.slane %v4850_v40, %v4695_v9  ;;  %v1582_v19 = vrot.slane %v4850_v40, %v4698_v10 }
 0x2f5   :  { %v3227_v20 = vcombine.low %v3218_v58, %v3225_v60  ;;  %v1586_v21 = vrot.slane %v4850_v40, %v4701_v11  ;;  %v2851_v23 = vcombine.low %v1558_v0, %v1562_v52  ;;  %v2852_v25 = vcombine.low %v1566_v57, %v1570_v24 }
 0x2f6   :  { %3672 = vperm.xlu1 %4267, %v2703_v3   ;;  %v3234_v27 = vrot.slane %v3226_v14, %v4705_v13  ;;  %v2853_v31 = vcombine.low %v1574_v12, %v1578_v15  ;;  %v1846_v32 = vrot.slane %v5031_v63, %v4680_v54  ;;  %v1850_v30 = vrot.slane %v5031_v63, %v4683_v4  ;;  %v977_v15 = vpop.xlane.xlu1 %976 }
 0x2f7   :  { %v3241_v17 = vrot.slane %v3227_v20, %v4705_v13  ;;  %v2854_v33 = vcombine.low %v1582_v19, %v1586_v21  ;;  %v2861_v34 = vrot.slane %v2851_v23, %v4705_v13  ;;  %v2868_v35 = vrot.slane %v2852_v25, %v4705_v13  ;;  %v974_v19 = vpop.xlane.xlu0 %973 }
 0x2f8   :  { %v2875_v40 = vrot.slane %v2853_v31, %v4705_v13  ;;  %v1854_v36 = vrot.slane %v5031_v63, %v4686_v5  ;;  %v1858_v37 = vrot.slane %v5031_v63, %v4689_v6  ;;  %v1862_v38 = vrot.slane %v5031_v63, %v4692_v8 }
 0x2f9   :  { %v3242_v59 = vcombine.low %v3234_v27, %v3241_v17  ;;  %v2882_v16 = vrot.slane %v2854_v33, %v4705_v13  ;;  %v2883_v41 = vcombine.low %v2861_v34, %v2868_v35  ;;  %v1866_v42 = vrot.slane %v5031_v63, %v4695_v9 }
 0x2fa   :  { %v1870_v43 = vrot.slane %v5031_v63, %v4698_v10  ;;  %v1874_v46 = vrot.slane %v5031_v63, %v4701_v11  ;;  %v3292_v44 = vcombine.low %v1846_v32, %v1850_v30  ;;  %v3293_v47 = vcombine.low %v1854_v36, %v1858_v37 }
 0x2fb   :  { %3705 = vperm.xlu0 %4268, %v3242_v59   ;;  %v2884_v49 = vcombine.low %v2875_v40, %v2882_v16  ;;  %v2891_v51 = vrot.slane %v2883_v41, %v4705_v13  ;;  %v3294_v22 = vcombine.low %v1862_v38, %v1866_v42  ;;  %v1622_v0 = vrot.slane %v4900_v18, %v4680_v54 }
 0x2fc   :  { %v3295_v52 = vcombine.low %v1870_v43, %v1874_v46  ;;  %v3302_v53 = vrot.slane %v3292_v44, %v4705_v13  ;;  %v3309_v55 = vrot.slane %v3293_v47, %v4705_v13  ;;  %v1626_v56 = vrot.slane %v4900_v18, %v4683_v4 }
 0x2fd   :  { %v2898_v63 = vrot.slane %v2884_v49, %v4705_v13  ;;  %v3316_v57 = vrot.slane %v3294_v22, %v4705_v13  ;;  %v1630_v58 = vrot.slane %v4900_v18, %v4686_v5  ;;  %v1634_v60 = vrot.slane %v4900_v18, %v4689_v6 }
 0x2fe   :  { %v3323_v24 = vrot.slane %v3295_v52, %v4705_v13  ;;  %v3324_v12 = vcombine.low %v3302_v53, %v3309_v55  ;;  %v1638_v3 = vrot.slane %v4900_v18, %v4692_v8  ;;  %v1642_v14 = vrot.slane %v4900_v18, %v4695_v9 }
 0x2ff   :  { %v2899_v20 = vcombine.low %v2891_v51, %v2898_v63  ;;  %v1646_v21 = vrot.slane %v4900_v18, %v4698_v10  ;;  %v1650_v23 = vrot.slane %v4900_v18, %v4701_v11  ;;  %v2949_v25 = vcombine.low %v1622_v0, %v1626_v56 }
 0x300   :  { %v3325_v27 = vcombine.low %v3316_v57, %v3323_v24  ;;  %v3332_v31 = vrot.slane %v3324_v12, %v4705_v13  ;;  %v2950_v32 = vcombine.low %v1630_v58, %v1634_v60  ;;  %v2951_v30 = vcombine.low %v1638_v3, %v1642_v14 }
 0x301   :  { %3684 = vperm.xlu1 %4267, %v2899_v20   ;;  %v2952_v17 = vcombine.low %v1646_v21, %v1650_v23  ;;  %v2959_v33 = vrot.slane %v2949_v25, %v4705_v13  ;;  %v5223_v34 = vadd.f32 %v4677_v2, %v977_v15  ;;  %v5226_v35 = vadd.f32 %v4677_v2, %v974_v19 }
 0x302   :  { %v3339_v40 = vrot.slane %v3325_v27, %v4705_v13  ;;  %v2966_v18 = vrot.slane %v2950_v32, %v4705_v13  ;;  %v2973_v36 = vrot.slane %v2951_v30, %v4705_v13  ;;  %v1910_v37 = vrot.slane %v5080_v50, %v4680_v54 }
 0x303   :  { %v2980_v38 = vrot.slane %v2952_v17, %v4705_v13  ;;  %v1914_v59 = vrot.slane %v5080_v50, %v4683_v4  ;;  %v1918_v16 = vrot.slane %v5080_v50, %v4686_v5  ;;  %v1922_v2 = vrot.slane %v5080_v50, %v4689_v6 }
 0x304   :  { %v3340_v41 = vcombine.low %v3332_v31, %v3339_v40  ;;  %v2981_v42 = vcombine.low %v2959_v33, %v2966_v18  ;;  %v1926_v43 = vrot.slane %v5080_v50, %v4692_v8  ;;  %v1930_v46 = vrot.slane %v5080_v50, %v4695_v9 }
 0x305   :  { %v2982_v44 = vcombine.low %v2973_v36, %v2980_v38  ;;  %v1934_v47 = vrot.slane %v5080_v50, %v4698_v10  ;;  %v1938_v49 = vrot.slane %v5080_v50, %v4701_v11  ;;  %v3390_v51 = vcombine.low %v1910_v37, %v1914_v59 }
 0x306   :  { %3711 = vperm.xlu0 %4268, %v3340_v41   ;;  %v2989_v22 = vrot.slane %v2981_v42, %v4705_v13  ;;  %v3391_v0 = vcombine.low %v1918_v16, %v1922_v2  ;;  %v3392_v52 = vcombine.low %v1926_v43, %v1930_v46  ;;  %v1686_v53 = vrot.slane %v4928_v48, %v4680_v54 }
 0x307   :  { %v2996_v55 = vrot.slane %v2982_v44, %v4705_v13  ;;  %v3393_v56 = vcombine.low %v1934_v47, %v1938_v49  ;;  %v3400_v63 = vrot.slane %v3390_v51, %v4705_v13  ;;  %v1690_v57 = vrot.slane %v4928_v48, %v4683_v4 }
 0x308   :  { %v3407_v58 = vrot.slane %v3391_v0, %v4705_v13  ;;  %v3414_v50 = vrot.slane %v3392_v52, %v4705_v13  ;;  %v1694_v60 = vrot.slane %v4928_v48, %v4686_v5  ;;  %v1698_v24 = vrot.slane %v4928_v48, %v4689_v6 }
 0x309   :  { %v2997_v12 = vcombine.low %v2989_v22, %v2996_v55  ;;  %v3421_v3 = vrot.slane %v3393_v56, %v4705_v13  ;;  %v1702_v14 = vrot.slane %v4928_v48, %v4692_v8  ;;  %v1706_v15 = vrot.slane %v4928_v48, %v4695_v9 }
 0x30a   :  { %v3422_v19 = vcombine.low %v3400_v63, %v3407_v58  ;;  %v1710_v20 = vrot.slane %v4928_v48, %v4698_v10  ;;  %v1714_v21 = vrot.slane %v4928_v48, %v4701_v11  ;;  %v3047_v23 = vcombine.low %v1686_v53, %v1690_v57 }
 0x30b   :  { %3690 = vperm.xlu1 %4267, %v2997_v12   ;;  %v3423_v25 = vcombine.low %v3414_v50, %v3421_v3  ;;  %v3048_v27 = vcombine.low %v1694_v60, %v1698_v24  ;;  %v3049_v31 = vcombine.low %v1702_v14, %v1706_v15  ;;  %v1750_v32 = vrot.slane %v4957_v29, %v4680_v54 }
 0x30c   :  { %v3430_v30 = vrot.slane %v3422_v19, %v4705_v13  ;;  %v3050_v17 = vcombine.low %v1710_v20, %v1714_v21  ;;  %v3057_v33 = vrot.slane %v3047_v23, %v4705_v13  ;;  %v1754_v40 = vrot.slane %v4957_v29, %v4683_v4 }
 0x30d   :  { %v3437_v18 = vrot.slane %v3423_v25, %v4705_v13  ;;  %v3064_v48 = vrot.slane %v3048_v27, %v4705_v13  ;;  %v3071_v36 = vrot.slane %v3049_v31, %v4705_v13  ;;  %v1758_v37 = vrot.slane %v4957_v29, %v4686_v5 }
 0x30e   :  { %v3078_v38 = vrot.slane %v3050_v17, %v4705_v13  ;;  %v1762_v59 = vrot.slane %v4957_v29, %v4689_v6  ;;  %v1766_v16 = vrot.slane %v4957_v29, %v4692_v8  ;;  %v1770_v2 = vrot.slane %v4957_v29, %v4695_v9 }
 0x30f   :  { %v3438_v41 = vcombine.low %v3430_v30, %v3437_v18  ;;  %v3079_v42 = vcombine.low %v3057_v33, %v3064_v48  ;;  %v1774_v43 = vrot.slane %v4957_v29, %v4698_v10  ;;  %v1778_v46 = vrot.slane %v4957_v29, %v4701_v11 }
 0x310   :  { %v3080_v44 = vcombine.low %v3071_v36, %v3078_v38  ;;  %v3145_v47 = vcombine.low %v1750_v32, %v1754_v40  ;;  %v3146_v49 = vcombine.low %v1758_v37, %v1762_v59  ;;  %v3147_v51 = vcombine.low %v1766_v16, %v1770_v2 }
 0x311   :  { %3717 = vperm.xlu0 %4268, %v3438_v41   ;;  %v3087_v22 = vrot.slane %v3079_v42, %v4705_v13  ;;  %v3148_v0 = vcombine.low %v1774_v43, %v1778_v46  ;;  %v1878_v52 = vrot.slane %v5036_v45, %v4680_v54  ;;  %v1882_v53 = vrot.slane %v5036_v45, %v4683_v4 }
 0x312   :  { %v3094_v55 = vrot.slane %v3080_v44, %v4705_v13  ;;  %v3155_v56 = vrot.slane %v3145_v47, %v4705_v13  ;;  %v3162_v29 = vrot.slane %v3146_v49, %v4705_v13  ;;  %v3169_v63 = vrot.slane %v3147_v51, %v4705_v13 }
 0x313   :  { %v3176_v57 = vrot.slane %v3148_v0, %v4705_v13  ;;  %v1886_v58 = vrot.slane %v5036_v45, %v4686_v5  ;;  %v1890_v50 = vrot.slane %v5036_v45, %v4689_v6  ;;  %v1894_v60 = vrot.slane %v5036_v45, %v4692_v8 }
 0x314   :  { %v3095_v24 = vcombine.low %v3087_v22, %v3094_v55  ;;  %v3177_v12 = vcombine.low %v3155_v56, %v3162_v29  ;;  %v1898_v3 = vrot.slane %v5036_v45, %v4695_v9  ;;  %v1902_v14 = vrot.slane %v5036_v45, %v4698_v10 }
 0x315   :  { %v3178_v15 = vcombine.low %v3169_v63, %v3176_v57  ;;  %v1906_v19 = vrot.slane %v5036_v45, %v4701_v11  ;;  %v3341_v20 = vcombine.low %v1878_v52, %v1882_v53  ;;  %v3342_v21 = vcombine.low %v1886_v58, %v1890_v50 }
 0x316   :  { %3696 = vperm.xlu1 %4267, %v3095_v24   ;;  %v3185_v23 = vrot.slane %v3177_v12, %v4705_v13  ;;  %v3343_v25 = vcombine.low %v1894_v60, %v1898_v3  ;;  %v1814_v27 = vrot.slane %v4986_v61, %v4680_v54  ;;  %v1818_v31 = vrot.slane %v4986_v61, %v4683_v4 }
 0x317   :  { %v3192_v32 = vrot.slane %v3178_v15, %v4705_v13  ;;  %v3344_v30 = vcombine.low %v1902_v14, %v1906_v19  ;;  %v3351_v17 = vrot.slane %v3341_v20, %v4705_v13  ;;  %v3358_v33 = vrot.slane %v3342_v21, %v4705_v13 }
 0x318   :  { %v3365_v45 = vrot.slane %v3343_v25, %v4705_v13  ;;  %v1822_v40 = vrot.slane %v4986_v61, %v4686_v5  ;;  %v1826_v18 = vrot.slane %v4986_v61, %v4689_v6  ;;  %v1830_v48 = vrot.slane %v4986_v61, %v4692_v8 }
 0x319   :  { %v3193_v36 = vcombine.low %v3185_v23, %v3192_v32  ;;  %v3372_v37 = vrot.slane %v3344_v30, %v4705_v13  ;;  %v3373_v38 = vcombine.low %v3351_v17, %v3358_v33  ;;  %v1834_v59 = vrot.slane %v4986_v61, %v4695_v9 }
 0x31a   :  { %v1838_v16 = vrot.slane %v4986_v61, %v4698_v10  ;;  %v1842_v2 = vrot.slane %v4986_v61, %v4701_v11  ;;  %v3243_v41 = vcombine.low %v1814_v27, %v1818_v31  ;;  %v3244_v42 = vcombine.low %v1822_v40, %v1826_v18 }
 0x31b   :  { %3702 = vperm.xlu1 %4267, %v3193_v36   ;;  %v3374_v43 = vcombine.low %v3365_v45, %v3372_v37  ;;  %v3381_v46 = vrot.slane %v3373_v38, %v4705_v13  ;;  %v3245_v44 = vcombine.low %v1830_v48, %v1834_v59  ;;  %v1974_v47 = vrot.slane %v5128_v28, %v4680_v54 }
 0x31c   :  { %v3246_v49 = vcombine.low %v1838_v16, %v1842_v2  ;;  %v3253_v51 = vrot.slane %v3243_v41, %v4705_v13  ;;  %v3260_v22 = vrot.slane %v3244_v42, %v4705_v13  ;;  %v1978_v0 = vrot.slane %v5128_v28, %v4683_v4 }
 0x31d   :  { %v3388_v61 = vrot.slane %v3374_v43, %v4705_v13  ;;  %v3267_v52 = vrot.slane %v3245_v44, %v4705_v13  ;;  %v1982_v53 = vrot.slane %v5128_v28, %v4686_v5  ;;  %v1986_v55 = vrot.slane %v5128_v28, %v4689_v6 }
 0x31e   :  { %v3274_v56 = vrot.slane %v3246_v49, %v4705_v13  ;;  %v3275_v29 = vcombine.low %v3253_v51, %v3260_v22  ;;  %v1990_v63 = vrot.slane %v5128_v28, %v4692_v8  ;;  %v1994_v57 = vrot.slane %v5128_v28, %v4695_v9 }
 0x31f   :  { %v3389_v58 = vcombine.low %v3381_v46, %v3388_v61  ;;  %v1998_v50 = vrot.slane %v5128_v28, %v4698_v10  ;;  %v2002_v60 = vrot.slane %v5128_v28, %v4701_v11  ;;  %v3488_v24 = vcombine.low %v1974_v47, %v1978_v0 }
 0x320   :  { %v3276_v12 = vcombine.low %v3267_v52, %v3274_v56  ;;  %v3283_v3 = vrot.slane %v3275_v29, %v4705_v13  ;;  %v3489_v14 = vcombine.low %v1982_v53, %v1986_v55  ;;  %v3490_v15 = vcombine.low %v1990_v63, %v1994_v57 }
 0x321   :  { %3714 = vperm.xlu0 %4268, %v3389_v58   ;;  %v3491_v19 = vcombine.low %v1998_v50, %v2002_v60  ;;  %v3498_v20 = vrot.slane %v3488_v24, %v4705_v13  ;;  %v1494_v21 = vrot.slane %v4824_v39, %v4680_v54  ;;  %v1498_v23 = vrot.slane %v4824_v39, %v4683_v4 }
 0x322   :  { %v3290_v25 = vrot.slane %v3276_v12, %v4705_v13  ;;  %v3505_v28 = vrot.slane %v3489_v14, %v4705_v13  ;;  %v3512_v27 = vrot.slane %v3490_v15, %v4705_v13  ;;  %v1502_v31 = vrot.slane %v4824_v39, %v4686_v5 }
 0x323   :  { %v3519_v32 = vrot.slane %v3491_v19, %v4705_v13  ;;  %v1506_v30 = vrot.slane %v4824_v39, %v4689_v6  ;;  %v1510_v17 = vrot.slane %v4824_v39, %v4692_v8  ;;  %v1514_v33 = vrot.slane %v4824_v39, %v4695_v9 }
 0x324   :  { %v3291_v45 = vcombine.low %v3283_v3, %v3290_v25  ;;  %v3520_v40 = vcombine.low %v3498_v20, %v3505_v28  ;;  %v1518_v18 = vrot.slane %v4824_v39, %v4698_v10  ;;  %v1522_v48 = vrot.slane %v4824_v39, %v4701_v11 }
 0x325   :  { %v3521_v36 = vcombine.low %v3512_v27, %v3519_v32  ;;  %v2753_v37 = vcombine.low %v1494_v21, %v1498_v23  ;;  %v2754_v38 = vcombine.low %v1502_v31, %v1506_v30  ;;  %v2755_v59 = vcombine.low %v1510_v17, %v1514_v33 }
 0x326   :  { %3708 = vperm.xlu1 %4267, %v3291_v45   ;;  %v3528_v16 = vrot.slane %v3520_v40, %v4705_v13  ;;  %v2756_v2 = vcombine.low %v1518_v18, %v1522_v48  ;;  %v1942_v41 = vrot.slane %v5131_v26, %v4680_v54  ;;  %v1946_v42 = vrot.slane %v5131_v26, %v4683_v4 }
 0x327   :  { %v3535_v43 = vrot.slane %v3521_v36, %v4705_v13  ;;  %v2763_v46 = vrot.slane %v2753_v37, %v4705_v13  ;;  %v2770_v39 = vrot.slane %v2754_v38, %v4705_v13  ;;  %v2777_v44 = vrot.slane %v2755_v59, %v4705_v13 }
 0x328   :  { %v2784_v47 = vrot.slane %v2756_v2, %v4705_v13  ;;  %v1950_v49 = vrot.slane %v5131_v26, %v4686_v5  ;;  %v1954_v51 = vrot.slane %v5131_v26, %v4689_v6  ;;  %v1958_v22 = vrot.slane %v5131_v26, %v4692_v8 }
 0x329   :  { %v3536_v0 = vcombine.low %v3528_v16, %v3535_v43  ;;  %v2785_v61 = vcombine.low %v2763_v46, %v2770_v39  ;;  %v1962_v52 = vrot.slane %v5131_v26, %v4695_v9  ;;  %v1966_v53 = vrot.slane %v5131_v26, %v4698_v10 }
 0x32a   :  { %v2786_v55 = vcombine.low %v2777_v44, %v2784_v47  ;;  %v1970_v56 = vrot.slane %v5131_v26, %v4701_v11  ;;  %v3439_v29 = vcombine.low %v1942_v41, %v1946_v42  ;;  %v3440_v63 = vcombine.low %v1950_v49, %v1954_v51 }
 0x32b   :  { %3723 = vperm.xlu0 %4268, %v3536_v0   ;;  %v2793_v57 = vrot.slane %v2785_v61, %v4705_v13  ;;  %v3441_v58 = vcombine.low %v1958_v22, %v1962_v52  ;;  %v1526_v50 = vrot.slane %v4847_v7, %v4680_v54  ;;  %v1530_v60 = vrot.slane %v4847_v7, %v4683_v4 }
 0x32c   :  { %v2800_v24 = vrot.slane %v2786_v55, %v4705_v13  ;;  %v3442_v12 = vcombine.low %v1966_v53, %v1970_v56  ;;  %v3449_v3 = vrot.slane %v3439_v29, %v4705_v13  ;;  %v3456_v14 = vrot.slane %v3440_v63, %v4705_v13 }
 0x32d   :  { %v3463_v26 = vrot.slane %v3441_v58, %v4705_v13  ;;  %v1534_v15 = vrot.slane %v4847_v7, %v4686_v5  ;;  %v1538_v19 = vrot.slane %v4847_v7, %v4689_v6  ;;  %v1542_v20 = vrot.slane %v4847_v7, %v4692_v8 }
 0x32e   :  { %v2801_v21 = vcombine.low %v2793_v57, %v2800_v24  ;;  %v3470_v23 = vrot.slane %v3442_v12, %v4705_v13  ;;  %v3471_v25 = vcombine.low %v3449_v3, %v3456_v14  ;;  %v1546_v28 = vrot.slane %v4847_v7, %v4695_v9 }
 0x32f   :  { %v1550_v27 = vrot.slane %v4847_v7, %v4698_v10  ;;  %v1554_v31 = vrot.slane %v4847_v7, %v4701_v11  ;;  %v2802_v32 = vcombine.low %v1526_v50, %v1530_v60  ;;  %v2803_v30 = vcombine.low %v1534_v15, %v1538_v19 }
 0x330   :  { %3678 = vperm.xlu1 %4267, %v2801_v21   ;;  %v3472_v17 = vcombine.low %v3463_v26, %v3470_v23  ;;  %v3479_v33 = vrot.slane %v3471_v25, %v4705_v13  ;;  %v2804_v45 = vcombine.low %v1542_v20, %v1546_v28  ;;  %v2006_v40 = vrot.slane %v5226_v35, %v4680_v54 }
 0x331   :  { %v2805_v18 = vcombine.low %v1550_v27, %v1554_v31  ;;  %v2812_v48 = vrot.slane %v2802_v32, %v4705_v13  ;;  %v2819_v36 = vrot.slane %v2803_v30, %v4705_v13  ;;  %v2010_v37 = vrot.slane %v5226_v35, %v4683_v4  ;;  %v3640_v27 = vpop.permute.xlu1 %3639 }
 0x332   :  { %v3486_v7 = vrot.slane %v3472_v17, %v4705_v13  ;;  %v2826_v38 = vrot.slane %v2804_v45, %v4705_v13  ;;  %v2014_v59 = vrot.slane %v5226_v35, %v4686_v5  ;;  %v2018_v16 = vrot.slane %v5226_v35, %v4689_v6 }
 0x333   :  { %v2833_v2 = vrot.slane %v2805_v18, %v4705_v13  ;;  %v2834_v41 = vcombine.low %v2812_v48, %v2819_v36  ;;  %v2022_v42 = vrot.slane %v5226_v35, %v4692_v8  ;;  %v2026_v43 = vrot.slane %v5226_v35, %v4695_v9  ;;  %v3637_v48 = vpop.permute.xlu0 %3636 }
 0x334   :  { %v3487_v46 = vcombine.low %v3479_v33, %v3486_v7  ;;  %v2030_v39 = vrot.slane %v5226_v35, %v4698_v10  ;;  %v2034_v44 = vrot.slane %v5226_v35, %v4701_v11  ;;  %v3537_v47 = vcombine.low %v2006_v40, %v2010_v37 }
 0x335   :  { %v2835_v49 = vcombine.low %v2826_v38, %v2833_v2  ;;  %v2842_v51 = vrot.slane %v2834_v41, %v4705_v13  ;;  %v3538_v22 = vcombine.low %v2014_v59, %v2018_v16  ;;  %v3539_v0 = vcombine.low %v2022_v42, %v2026_v43  ;;  %v5476_v31 = vpop.permute.xlu1 %3645 }
 0x336   :  { %3720 = vperm.xlu0 %4268, %v3487_v46   ;;  %v3540_v61 = vcombine.low %v2030_v39, %v2034_v44  ;;  %v3547_v52 = vrot.slane %v3537_v47, %v4705_v13  ;;  %v2038_v53 = vrot.slane %v5223_v34, %v4680_v54  ;;  %v2042_v55 = vrot.slane %v5223_v34, %v4683_v4 }
 0x337   :  { %v2849_v56 = vrot.slane %v2835_v49, %v4705_v13  ;;  %v3554_v35 = vrot.slane %v3538_v22, %v4705_v13  ;;  %v3561_v29 = vrot.slane %v3539_v0, %v4705_v13  ;;  %v2046_v63 = vrot.slane %v5223_v34, %v4686_v5 }
 0x338   :  { %v3568_v57 = vrot.slane %v3540_v61, %v4705_v13  ;;  %v2050_v58 = vrot.slane %v5223_v34, %v4689_v6  ;;  %v2054_v54 = vrot.slane %v5223_v34, %v4692_v8  ;;  %v2058_v4 = vrot.slane %v5223_v34, %v4695_v9 }
 0x339   :  { %v2850_v50 = vcombine.low %v2842_v51, %v2849_v56  ;;  %v3569_v60 = vcombine.low %v3547_v52, %v3554_v35  ;;  %v2062_v24 = vrot.slane %v5223_v34, %v4698_v10  ;;  %v2066_v12 = vrot.slane %v5223_v34, %v4701_v11  ;;  %v3643_v32 = vpop.permute.xlu1 %3642 }
 0x33a   :  { %v3570_v5 = vcombine.low %v3561_v29, %v3568_v57  ;;  %v3586_v3 = vcombine.low %v2038_v53, %v2042_v55  ;;  %v3587_v14 = vcombine.low %v2046_v63, %v2050_v58  ;;  %v3588_v26 = vcombine.low %v2054_v54, %v2058_v4 }
 0x33b   :  { %3681 = vperm.xlu1 %4267, %v2850_v50   ;;  %v3577_v6 = vrot.slane %v3569_v60, %v4705_v13  ;;  %v3589_v15 = vcombine.low %v2062_v24, %v2066_v12  ;;  %v5501_v43 = vand.u32 127, %v1043_v62 }
 0x33c   :  { %v3584_v8 = vrot.slane %v3570_v5, %v4705_v13  ;;  %v3596_v9 = vrot.slane %v3586_v3, %v4705_v13  ;;  %v3603_v19 = vrot.slane %v3587_v14, %v4705_v13  ;;  %v3610_v20 = vrot.slane %v3588_v26, %v4705_v13 }
 0x33d   :  { %v3617_v10 = vrot.slane %v3589_v15, %v4705_v13  ;;  %v5478_v30 = vpop.permute.xlu1 %3651  ;;  %v5490_v36 = vpop.permute.xlu0 %3663  ;;  %v3744_v39 = vadd.s32 4294967280, %v5501_v43  ;;  %v3737_v44 = vadd.s32 4294967288, %v5501_v43  ;;  %v3735_v49 = vsub.s32 %v5501_v43, %v4672_v1 }
 0x33e   :  { %v3585_v21 = vcombine.low %v3577_v6, %v3584_v8  ;;  %v3618_v11 = vcombine.low %v3596_v9, %v3603_v19  ;;  %v3758_v0 = vadd.s32 4294967264, %v5501_v43  ;;  %v3751_v52 = vadd.s32 4294967272, %v5501_v43 }
 0x33f   :  { %v3619_v34 = vcombine.low %v3610_v20, %v3617_v10  ;;  %v3747_v22 = vsub.s32 %v3744_v39, %v4672_v1  ;;  %v3740_v61 = vsub.s32 %v3737_v44, %v4672_v1  ;;  %v3765_v56 = vadd.s32 4294967256, %v5501_v43 }
 0x340   :  { %3726 = vperm.xlu0 %4268, %v3585_v21   ;;  %v3626_v23 = vrot.slane %v3618_v11, %v4705_v13  ;;  %v3736_v63 = vrot.slane %v3637_v48, %v3735_v49  ;;  %v3761_v57 = vsub.s32 %v3758_v0, %v4672_v1  ;;  %v3772_v58 = vadd.s32 4294967248, %v5501_v43 }
 0x341   :  { %v3633_v25 = vrot.slane %v3619_v34, %v4705_v13  ;;  %v5480_v17 = vpop.permute.xlu1 %3648  ;;  %v3754_v54 = vsub.s32 %v3751_v52, %v4672_v1  ;;  %v3748_v4 = vrot.slane %v3643_v32, %v3747_v22  ;;  %v3741_v24 = vrot.slane %v3640_v27, %v3740_v61 }
 0x342   :  { %v3768_v3 = vsub.s32 %v3765_v56, %v4672_v1  ;;  %v3775_v6 = vsub.s32 %v3772_v58, %v4672_v1  ;;  %v3786_v15 = vadd.s32 4294967232, %v5501_v43  ;;  %v3762_v9 = vrot.slane %v5480_v17, %v3761_v57 }
 0x343   :  { %v3634_v28 = vcombine.low %v3626_v23, %v3633_v25  ;;  %v3743_v26 = vsel %vm3742_vm3, %v3741_v24, %v3736_v63  ;;  %v3779_v19 = vadd.s32 4294967240, %v5501_v43  ;;  %v3755_v21 = vrot.slane %v5476_v31, %v3754_v54 }
 0x344   :  { %v3750_v8 = vsel %vm3749_vm4, %v3748_v4, %v3743_v26  ;;  %v3793_v27 = vadd.s32 4294967224, %v5501_v43  ;;  %v3789_v32 = vsub.s32 %v3786_v15, %v4672_v1 }
 0x345   :  { %3729 = vperm.xlu0 %4268, %v3634_v28   ;;  %v5482_v33 = vpop.permute.xlu1 %3657  ;;  %v3757_v28 = vsel %vm3756_vm5, %v3755_v21, %v3750_v8  ;;  %v3782_v48 = vsub.s32 %v3779_v19, %v4672_v1 }
 0x346   :  { %v3764_v17 = vsel %vm3763_vm6, %v3762_v9, %v3757_v28 }
 0x349   :  { %v5484_v45 = vpop.permute.xlu1 %3654 }
 0x34a   :  { %v3776_v31 = vrot.slane %v5484_v45, %v3775_v6 }
 0x34e   :  { %v5486_v40 = vpop.permute.xlu1 %3660 }
 0x34f   :  { %v3790_v45 = vrot.slane %v5486_v40, %v3789_v32 }
 0x354   :  { %v5488_v18 = vpop.permute.xlu1 %3669 }
 0x35a   :  { %v3688_v7 = vpop.permute.xlu0 %3687 }
 0x35b   :  { %v3849_v35 = vrot.slane %v3688_v7, %v3740_v61 }
 0x35f   :  { %v5492_v37 = vpop.permute.xlu1 %3666 }
 0x365   :  { %v3694_v59 = vpop.permute.xlu0 %3693 }
 0x366   :  { %v3859_v14 = vrot.slane %v3694_v59, %v3754_v54  ;;  %v3800_v59 = vadd.s32 4294967216, %v5501_v43 }
 0x368   :  { %v3803_v52 = vsub.s32 %v3800_v59, %v4672_v1 }
 0x36a   :  { %v5494_v38 = vpop.permute.xlu1 %3675  ;;  %v3804_v54 = vrot.slane %v5492_v37, %v3803_v52 }
 0x36f   :  { %v3700_v2 = vpop.permute.xlu0 %3699 }
 0x370   :  { %v3869_v23 = vrot.slane %v3700_v2, %v3768_v3 }
 0x375   :  { %v5496_v16 = vpop.permute.xlu1 %3672 }
 0x37a   :  { %v5498_v42 = vpop.permute.xlu0 %3705 }
 0x37b   :  { %v3879_v39 = vrot.slane %v5498_v42, %v3782_v48  ;;  %v3807_v42 = vadd.s32 4294967208, %v5501_v43 }
 0x380   :  { %v3685_v41 = vpop.permute.xlu1 %3684 }
 0x381   :  { %v3845_v53 = vrot.slane %v3685_v41, %v3735_v49  ;;  %v3796_v49 = vsub.s32 %v3793_v27, %v4672_v1 }
 0x383   :  { %v3850_v50 = vsel %vm3742_vm3, %v3849_v35, %v3845_v53  ;;  %v3797_v56 = vrot.slane %v5490_v36, %v3796_v49  ;;  %v3835_v36 = vadd.s32 4294967176, %v5501_v43 }
 0x385   :  { %v5505_v47 = vpop.permute.xlu0 %3711 }
 0x38a   :  { %v3691_v46 = vpop.permute.xlu1 %3690 }
 0x38b   :  { %v3854_v55 = vrot.slane %v3691_v46, %v3747_v22  ;;  %v3769_v46 = vrot.slane %v5478_v30, %v3768_v3  ;;  %v3814_v22 = vadd.s32 4294967200, %v5501_v43  ;;  %v3783_v30 = vrot.slane %v5482_v33, %v3782_v48 }
 0x38c   :  { %v3828_v33 = vadd.s32 4294967184, %v5501_v43 }
 0x38d   :  { %v3855_v12 = vsel %vm3749_vm4, %v3854_v55, %v3850_v50  ;;  %v3889_v55 = vrot.slane %v5505_v47, %v3796_v49  ;;  %v3817_v63 = vsub.s32 %v3814_v22, %v4672_v1  ;;  %v3821_v47 = vadd.s32 4294967192, %v5501_v43 }
 0x38e   :  { %v3860_v20 = vsel %vm3756_vm5, %v3859_v14, %v3855_v12  ;;  %v3831_v14 = vsub.s32 %v3828_v33, %v4672_v1  ;;  %v3838_v43 = vsub.s32 %v3835_v36, %v4672_v1 }
 0x38f   :  { %v3818_v37 = vrot.slane %v5496_v16, %v3817_v63  ;;  %v3824_v15 = vsub.s32 %v3821_v47, %v4672_v1 }
 0x390   :  { %v5514_v29 = vpop.permute.xlu0 %3717 }
 0x395   :  { %v3697_v51 = vpop.permute.xlu1 %3696 }
 0x396   :  { %v3864_v5 = vrot.slane %v3697_v51, %v3761_v57  ;;  %v3771_v51 = vsel %vm3770_vm7, %v3769_v46, %v3764_v17 }
 0x397   :  { %v3778_v61 = vsel %vm3777_vm8, %v3776_v31, %v3771_v51 }
 0x398   :  { %v3865_v11 = vsel %vm3763_vm6, %v3864_v5, %v3860_v20  ;;  %v3785_v35 = vsel %vm3784_vm9, %v3783_v30, %v3778_v61 }
 0x399   :  { %v3870_v7 = vsel %vm3770_vm7, %v3869_v23, %v3865_v11  ;;  %v3792_v40 = vsel %vm3791_vm10, %v3790_v45, %v3785_v35  ;;  %v3825_v11 = vrot.slane %v5494_v38, %v3824_v15 }
 0x39a   :  { %v3703_v60 = vpop.permute.xlu1 %3702  ;;  %v3799_v12 = vsel %vm3798_vm11, %v3797_v56, %v3792_v40 }
 0x39b   :  { %v3874_v34 = vrot.slane %v3703_v60, %v3775_v6  ;;  %v3810_v60 = vsub.s32 %v3807_v42, %v4672_v1  ;;  %v3806_v3 = vsel %vm3805_vm12, %v3804_v54, %v3799_v12 }
 0x39d   :  { %v3875_v41 = vsel %vm3777_vm8, %v3874_v34, %v3870_v7  ;;  %v3899_v5 = vrot.slane %v5514_v29, %v3810_v60  ;;  %v3811_v6 = vrot.slane %v5488_v18, %v3810_v60 }
 0x39e   :  { %v3880_v0 = vsel %vm3784_vm9, %v3879_v39, %v3875_v41 }
 0x39f   :  { %v3813_v20 = vsel %vm3812_vm13, %v3811_v6, %v3806_v3 }
 0x3a0   :  { %v3715_v10 = vpop.permute.xlu0 %3714 }
 0x3a1   :  { %v3894_v4 = vrot.slane %v3715_v10, %v3803_v52  ;;  %v3820_v10 = vsel %vm3819_vm14, %v3818_v37, %v3813_v20 }
 0x3a5   :  { %v3709_v25 = vpop.permute.xlu1 %3708 }
 0x3a6   :  { %v3884_v2 = vrot.slane %v3709_v25, %v3789_v32  ;;  %v3827_v25 = vsel %vm3826_vm15, %v3825_v11, %v3820_v10 }
 0x3a8   :  { %v3885_v53 = vsel %vm3791_vm10, %v3884_v2, %v3880_v0 }
 0x3a9   :  { %v3890_v57 = vsel %vm3798_vm11, %v3889_v55, %v3885_v53 }
 0x3aa   :  { %v3724_v44 = vpop.permute.xlu0 %3723  ;;  %v3895_v24 = vsel %vm3805_vm12, %v3894_v4, %v3890_v57 }
 0x3ab   :  { %v3900_v8 = vsel %vm3812_vm13, %v3899_v5, %v3895_v24  ;;  %v3909_v34 = vrot.slane %v3724_v44, %v3824_v15 }
 0x3af   :  { %v3679_v50 = vpop.permute.xlu1 %3678 }
 0x3b0   :  { %v3832_v29 = vrot.slane %v3679_v50, %v3831_v14 }
 0x3b2   :  { %v3834_v27 = vsel %vm3833_vm0, %v3832_v29, %v3827_v25 }
 0x3b5   :  { %v3721_v58 = vpop.permute.xlu0 %3720 }
 0x3b6   :  { %v3904_v26 = vrot.slane %v3721_v58, %v3817_v63 }
 0x3b8   :  { %v3905_v21 = vsel %vm3819_vm14, %v3904_v26, %v3900_v8 }
 0x3b9   :  { %v3910_v28 = vsel %vm3826_vm15, %v3909_v34, %v3905_v21 }
 0x3ba   :  { %v3682_v19 = vpop.permute.xlu1 %3681 }
 0x3bb   :  { %v3839_v18 = vrot.slane %v3682_v19, %v3838_v43 }
 0x3bd   :  { %v3841_v17 = vsel %vm3840_vm1, %v3839_v18, %v3834_v27 }
 0x3bf   :  { %v3727_v9 = vpop.permute.xlu0 %3726 }
 0x3c0   :  { %v3914_v16 = vrot.slane %v3727_v9, %v3831_v14 }
 0x3c2   :  { %v3915_v32 = vsel %vm3833_vm0, %v3914_v16, %v3910_v28 }
 0x3c4   :  { %v3730_v23 = vpop.permute.xlu0 %3729 }
 0x3c5   :  { %v3919_v1 = vrot.slane %v3730_v23, %v3838_v43 }
 0x3c7   :  { %v3920_v48 = vsel %vm3840_vm1, %v3919_v1, %v3915_v32 }
 0x3c8   :  { %v3921_v7 = vcombine.low %v3841_v17, %v3920_v48 }
 0x3ca   :  { %v3928_v31 = vrot.slane %v3921_v7, %v4705_v13 }
 0x3cc   :  { %v3935_v38 = vrot.slane %v3928_v31, %v4705_v13 }
 0x3ce   :  { %3941 = vst.msk [vmem:[#allocation9] sm:$0x3] %vm3939_vm2, %v3935_v38 }
 0x3cf   :  { %4346 = shalt.err (!%p4343_p0)
}
 0x3d0   :  { %s4347_s23 = scalar_lea.hbm %s5585_s7, 32 }
 0x3d1   :  { %p4348_p1 = scmp.ne.s32.totalorder %s5585_s7, %s4347_s23  ;;  %p4351_p2 = scmp.lt.u32.totalorder %s4347_s23, %s5585_s7 }
 0x3d3   :  { %p4353_p3 = pnand %p4351_p2, %p4348_p1 }
 0x3d5   :  { %4356 = shalt.err (!%p4353_p3)
}
 0x3d6   :  { %3951 = dma.vmem_to_hbm [thread:$0]  %s3949_s19, 32, %s5585_s7, [#allocation5]  }
 0x3d7   :  { %4361 = dma.done.wait [#allocation5], 32  }
 0x3d8   :  { %4362 = vsyncadd [#allocation5], 4294967264 }
 0x3d9   :  { %3955 = vsyncpa [#allocation4], 1 }
 0x3da   :  { %3956 = vsyncpa [#allocation7], 1 }
 0x3db   :  { %3957 = vsyncpa [#allocation5], 1 }

</bundles_post_ra>
